<compile_context>
chip_gen: v5e
topology: v5e:2x2
jax: 0.10.0
libtpu: 0.0.40
codegen_flags: <defaults>
</compile_context>

<pallas_src>
import functools

import numpy as np
import jax
import jax.numpy as jnp
from jax.experimental import pallas as pl
from jax.experimental.pallas import tpu as pltpu


# ---------------------------------------------------------------------------
# Small tiling helpers.
# ---------------------------------------------------------------------------
def _largest_divisor(n, cap):
    for t in range(min(cap, n), 0, -1):
        if n % t == 0:
            return t
    return 1


def _pick_tile(n, cap):
    # Largest tile <= cap dividing n; prefer multiples of 8 (sublane).
    if n <= cap:
        return n
    for t in range(cap - cap % 8, 7, -8):
        if n % t == 0:
            return t
    return _largest_divisor(n, cap)


def _vmem_capacity_bytes():
    try:
        return int(pltpu.get_tpu_info().vmem_capacity_bytes)
    except Exception:
        return 64 * 1024 * 1024  # conservative (v7x-sized) fallback


def _m_tile_cap():
    # v5e/v6e: 128 MiB VMEM -> big M tiles amortize the ~0.35us/step overhead.
    # v7x: 64 MiB VMEM -> keep the cap at 512.
    return 2048 if _vmem_capacity_bytes() >= 100 * 1024 * 1024 else 512


# ---------------------------------------------------------------------------
# Kernel 1 (the big one): fused backbone 1x1 conv (MXU, K-chunked) + ReLU ->
# [fc_new | decoder] slab, plus the AdaptiveAvgPool2d + Linear classification
# head folded into the finalize step via a resident per-image sum accumulator.
# ---------------------------------------------------------------------------
def _fused_head_kernel(x_ref, wbb_ref, bbb_ref, wfd_ref, bfd_ref,
                       wcls_ref, bcls_ref, slab_ref, cls_ref, dsum_ref,
                       *, kc, inv_hwf):
    m = pl.program_id(1)
    n_m = pl.num_programs(1)

    @pl.when(m == 0)
    def _():
        dsum_ref[...] = jnp.zeros_like(dsum_ref)

    tm = x_ref.shape[1]
    feat_dim = wfd_ref.shape[0]
    npad = wfd_ref.shape[1]
    nk = feat_dim // kc

    x = x_ref[0]                                            # (tm, cin_pad) f32

    # K-chunked: conv-matmul -> ReLU -> bf16 -> MXU accumulate. nk is tiny
    # (feat_dim/kc = 4), fully unrolled; the live intermediate is (tm, kc).
    acc = jnp.zeros((tm, npad), jnp.float32)
    for ki in range(nk):
        k0 = ki * kc
        feat = jnp.dot(x, wbb_ref[:, k0:k0 + kc],
                       preferred_element_type=jnp.float32)  # (tm, kc)  MXU
        feat = jnp.maximum(feat + bbb_ref[:, k0:k0 + kc], 0.0)           # ReLU
        acc = acc + jnp.dot(feat.astype(jnp.bfloat16),
                            wfd_ref[k0:k0 + kc, :],
                            preferred_element_type=jnp.float32)  # (tm, npad)

    y = acc + bfd_ref[...]                                  # (tm, npad) f32
    slab_ref[0] = y.astype(slab_ref.dtype)                  # lane-dense store

    # Running per-image sum of the slab (bias already included per token, so
    # sum/HWf is exactly AdaptiveAvgPool2d of the decoder output).
    dsum_ref[...] += jnp.sum(y, axis=0, keepdims=True)

    # Finalize: classification head fused here (only valid because the m axis
    # is sequential / "arbitrary"; do NOT mark it parallel with this pattern).
    @pl.when(m == n_m - 1)
    def _():
        mean = dsum_ref[...] * inv_hwf                      # (1, npad)
        cls = jnp.dot(mean, wcls_ref[...],
                      preferred_element_type=jnp.float32)   # (1, ncls_pad)
        cls_ref[0] = (cls + bcls_ref[...]).astype(cls_ref.dtype)


def fused_backbone_heads(tokens, w_bb, b_bb, w_fd, b_fd, w_cls, b_cls, tm, kc):
    # tokens: (B, HWf, cin_pad) -> slab (B, HWf, npad) f32, cls (B,1,ncls_pad)
    B, HWf, cin_pad = tokens.shape
    feat_dim = w_bb.shape[1]
    npad = w_fd.shape[1]
    ncls_pad = w_cls.shape[1]
    n_m = HWf // tm
    return pl.pallas_call(
        functools.partial(_fused_head_kernel, kc=kc, inv_hwf=1.0 / HWf),
        out_shape=(
            jax.ShapeDtypeStruct((B, HWf, npad), jnp.float32),
            jax.ShapeDtypeStruct((B, 1, ncls_pad), jnp.float32),
        ),
        grid_spec=pltpu.PrefetchScalarGridSpec(
            num_scalar_prefetch=0,
            grid=(B, n_m),
            in_specs=[
                pl.BlockSpec((1, tm, cin_pad), lambda b, m: (b, m, 0)),
                pl.BlockSpec((cin_pad, feat_dim), lambda b, m: (0, 0)),
                pl.BlockSpec((1, feat_dim), lambda b, m: (0, 0)),
                pl.BlockSpec((feat_dim, npad), lambda b, m: (0, 0)),
                pl.BlockSpec((1, npad), lambda b, m: (0, 0)),
                pl.BlockSpec((npad, ncls_pad), lambda b, m: (0, 0)),
                pl.BlockSpec((1, ncls_pad), lambda b, m: (0, 0)),
            ],
            out_specs=[
                pl.BlockSpec((1, tm, npad), lambda b, m: (b, m, 0)),
                pl.BlockSpec((1, 1, ncls_pad), lambda b, m: (b, 0, 0)),
            ],
            scratch_shapes=[pltpu.VMEM((1, npad), jnp.float32)],
        ),
        compiler_params=pltpu.CompilerParams(
            dimension_semantics=("parallel", "arbitrary"),
            vmem_limit_bytes=48 * 1024 * 1024),
    )(tokens, w_bb, b_bb.reshape(1, feat_dim), w_fd, b_fd, w_cls, b_cls)


# ---------------------------------------------------------------------------
# Kernel 2: separable 2-D resize, channel-batched and Hout-tiled.
#   W-resize: one flattened (cblk*Hin, Win) @ (Win, Wout) MXU matmul.
#   H-resize: per-channel (th, Hin) @ (Hin, Wout) matmuls (static unroll);
#             output minor dim = Wout stays lane-dense.
# ---------------------------------------------------------------------------
def _resize_kernel(x_ref, wh_ref, wwt_ref, o_ref, *, cblk):
    hin = x_ref.shape[1]
    win = x_ref.shape[2]
    x2 = x_ref[...].astype(jnp.float32).reshape(cblk * hin, win)
    tmp = jnp.dot(x2, wwt_ref[...],
                  preferred_element_type=jnp.float32)        # (cblk*hin, Wout)
    wh = wh_ref[...]                                         # (th, hin)
    for c in range(cblk):                                    # static unroll
        o_ref[c] = jnp.dot(wh, tmp[c * hin:(c + 1) * hin, :],
                           preferred_element_type=jnp.float32
                           ).astype(o_ref.dtype)


def resize2d(x, wh, ww, cblk_cap=16, th_cap=256):
    # x: (N, Hin, Win);  wh: (Hout, Hin);  ww: (Wout, Win)
    N, Hin, Win = x.shape
    Hout, Wout = wh.shape[0], ww.shape[0]
    cblk = _largest_divisor(N, cblk_cap)
    th = _pick_tile(Hout, th_cap)        # Hout row-tiling keeps blocks small
    wwt = jnp.transpose(ww)              # (Win, Wout)
    return pl.pallas_call(
        functools.partial(_resize_kernel, cblk=cblk),
        out_shape=jax.ShapeDtypeStruct((N, Hout, Wout), x.dtype),
        grid_spec=pltpu.PrefetchScalarGridSpec(
            num_scalar_prefetch=0,
            grid=(N // cblk, Hout // th),
            in_specs=[
                pl.BlockSpec((cblk, Hin, Win), lambda i, j: (i, 0, 0)),
                pl.BlockSpec((th, Hin), lambda i, j: (j, 0)),
                pl.BlockSpec((Win, Wout), lambda i, j: (0, 0)),
            ],
            out_specs=pl.BlockSpec((cblk, th, Wout), lambda i, j: (i, j, 0)),
        ),
        compiler_params=pltpu.CompilerParams(
            dimension_semantics=("parallel", "parallel"),
            vmem_limit_bytes=48 * 1024 * 1024),
    )(x, wh, wwt)


# ---------------------------------------------------------------------------
# Interpolation weight matrices matching torch.nn.functional.interpolate.
# ---------------------------------------------------------------------------
def bilinear_matrix(out_size, in_size):
    # mode='bilinear', align_corners=False
    scale = in_size / out_size
    W = np.zeros((out_size, in_size), dtype=np.float32)
    for i in range(out_size):
        src = (i + 0.5) * scale - 0.5
        if src < 0.0:
            src = 0.0
        i0 = min(int(np.floor(src)), in_size - 1)
        i1 = min(i0 + 1, in_size - 1)
        lam = src - i0
        W[i, i0] += 1.0 - lam
        W[i, i1] += lam
    return jnp.asarray(W)


def nearest_matrix(out_size, in_size):
    # mode='nearest' (legacy floor rule, not 'nearest-exact') -- exact ints.
    W = np.zeros((out_size, in_size), dtype=np.float32)
    for i in range(out_size):
        src = min((i * in_size) // out_size, in_size - 1)
        W[i, src] = 1.0
    return jnp.asarray(W)


# ---------------------------------------------------------------------------
# Full forward pass (upsample=True, classify_embedding=True,
# use_classification_head=True, upsample_embedding_mode='nearest').
# ---------------------------------------------------------------------------
def contrastive_segmentation_forward(x, params):
    # x: (B, C, H, W) NCHW, like PyTorch.
    B, C, H, W = x.shape
    feat_dim = params["w_bb"].shape[1]
    nc = params["w_fc"].shape[1]
    ndim = params["w_dec"].shape[1]
    nc_out = params["w_cls"].shape[1]
    n_used = nc + ndim
    npad = ((n_used + 127) // 128) * 128          # lane-dense slab (=128 here;
    ncls_pad = ((nc_out + 127) // 128) * 128      # do not grow for wider MXUs)

    # --- backbone front (synthetic): stride-2 subsample + channels-last glue.
    xf = x[:, :, ::2, ::2]                        # (B, C, Hf, Wf)
    Hf, Wf = xf.shape[2], xf.shape[3]
    HWf = Hf * Wf
    tokens = jnp.transpose(xf, (0, 2, 3, 1)).reshape(B, HWf, C)

    # Pad Cin to the f32 sublane tile (8) so the backbone conv is one MXU op.
    cin_pad = ((C + 7) // 8) * 8
    w_bb = params["w_bb"]
    if cin_pad != C:
        tokens = jnp.pad(tokens, ((0, 0), (0, 0), (0, cin_pad - C)))
        w_bb = jnp.pad(w_bb, ((0, cin_pad - C), (0, 0)))

    # --- fused [fc_new | decoder] weight slab, zero-padded to npad lanes.
    w_fd = jnp.zeros((feat_dim, npad), jnp.float32)
    w_fd = w_fd.at[:, :nc].set(params["w_fc"])
    w_fd = w_fd.at[:, nc:n_used].set(params["w_dec"]).astype(jnp.bfloat16)
    b_fd = jnp.zeros((1, npad), jnp.float32)
    b_fd = b_fd.at[0, :nc].set(params["b_fc"])
    b_fd = b_fd.at[0, nc:n_used].set(params["b_dec"])

    # --- classification-head weights lifted into slab-lane space (fc lanes
    # get zero rows, so the fused mean @ w_cls is exact).
    w_cls = jnp.zeros((npad, ncls_pad), jnp.float32)
    w_cls = w_cls.at[nc:n_used, :nc_out].set(params["w_cls"])
    b_cls = jnp.zeros((1, ncls_pad), jnp.float32)
    b_cls = b_cls.at[0, :nc_out].set(params["b_cls"])

    tm = _pick_tile(HWf, _m_tile_cap())
    kc = _largest_divisor(feat_dim, 512)
    slab, cls_pad = fused_backbone_heads(tokens, w_bb, params["b_bb"],
                                         w_fd, b_fd, w_cls, b_cls, tm, kc)
    # slab[:, :, :nc]       = fc_new(feat)   (cls embedding, low-res)
    # slab[:, :, nc:n_used] = decoder(feat)  (seg embedding, low-res)

    return_dict = {}

    # TODO(synk): resizing channels-last directly on the slab would drop these
    # two low-res NCHW relayouts, but the module contract is NCHW outputs.
    emb = jnp.transpose(slab[:, :, :nc].reshape(B, Hf, Wf, nc), (0, 3, 1, 2))
    cls_emb = resize2d(emb.reshape(B * nc, Hf, Wf),
                       nearest_matrix(H, Hf), nearest_matrix(W, Wf))
    return_dict["cls_emb"] = cls_emb.reshape(B, nc, H, W)

    dec = jnp.transpose(slab[:, :, nc:n_used].reshape(B, Hf, Wf, ndim),
                        (0, 3, 1, 2))
    seg = resize2d(dec.reshape(B * ndim, Hf, Wf),
                   bilinear_matrix(H, Hf), bilinear_matrix(W, Wf))
    return_dict["seg"] = seg.reshape(B, ndim, H, W)

    # Classification head was computed in the fused kernel's finalize step.
    return_dict["cls"] = cls_pad[:, 0, :nc_out]

    return return_dict


# ---------------------------------------------------------------------------
# Pure-JAX reference (same synthetic backbone/decoder, same interp matrices).
# ---------------------------------------------------------------------------
def _reference_forward(x, params):
    B, C, H, W = x.shape
    xf = x[:, :, ::2, ::2]
    Hf, Wf = xf.shape[2], xf.shape[3]
    tokens = jnp.transpose(xf, (0, 2, 3, 1)).reshape(B, Hf * Wf, C)
    feat = jnp.maximum(tokens @ params["w_bb"] + params["b_bb"], 0.0)
    fc = feat @ params["w_fc"] + params["b_fc"]
    dec = feat @ params["w_dec"] + params["b_dec"]
    nc = fc.shape[-1]
    ndim = dec.shape[-1]
    emb = jnp.transpose(fc.reshape(B, Hf, Wf, nc), (0, 3, 1, 2))
    decc = jnp.transpose(dec.reshape(B, Hf, Wf, ndim), (0, 3, 1, 2))
    wh_n, ww_n = nearest_matrix(H, Hf), nearest_matrix(W, Wf)
    wh_b, ww_b = bilinear_matrix(H, Hf), bilinear_matrix(W, Wf)
    cls_emb = jnp.einsum("oh,bchw,pw->bcop", wh_n, emb, ww_n)
    seg = jnp.einsum("oh,bchw,pw->bcop", wh_b, decc, ww_b)
    cls = decc.mean(axis=(2, 3)) @ params["w_cls"] + params["b_cls"]
    return {"cls_emb": cls_emb, "seg": seg, "cls": cls}


if __name__ == "__main__":
    B, C_IN, H, W = 2, 4, 16, 16
    FEAT = 2048          # fixed by fc_new = nn.Linear(2048, num_classes)
    NDIM = 32            # decoder output channels (ndim)
    NUM_CLASSES = 10

    key = jax.random.PRNGKey(0)
    ks = jax.random.split(key, 8)
    x = jax.random.normal(ks[0], (B, C_IN, H, W), jnp.float32)

    params = {
        # synthetic backbone: 1x1 conv C_IN -> 2048 (+ ReLU)
        "w_bb": jax.random.normal(ks[1], (C_IN, FEAT), jnp.float32) * 0.05,
        "b_bb": jax.random.normal(ks[2], (FEAT,), jnp.float32) * 0.01,
        # backbone.fc_new = Linear(2048, num_classes)
        "w_fc": jax.random.normal(ks[3], (FEAT, NUM_CLASSES), jnp.float32) * 0.02,
        "b_fc": jnp.zeros((NUM_CLASSES,), jnp.float32),
        # synthetic decoder: 1x1 conv 2048 -> ndim
        "w_dec": jax.random.normal(ks[4], (FEAT, NDIM), jnp.float32) * 0.02,
        "b_dec": jnp.zeros((NDIM,), jnp.float32),
        # classification_head = AdaptiveAvgPool2d(1)+Flatten+Linear(ndim, nc)
        "w_cls": jax.random.normal(ks[5], (NDIM, NUM_CLASSES), jnp.float32) * 0.1,
        "b_cls": jnp.zeros((NUM_CLASSES,), jnp.float32),
    }

    out = contrastive_segmentation_forward(x, params)
    out = jax.tree_util.tree_map(jax.block_until_ready, out)

    assert out["cls_emb"].shape == (B, NUM_CLASSES, H, W)
    assert out["seg"].shape == (B, NDIM, H, W)
    assert out["cls"].shape == (B, NUM_CLASSES)

    ref = _reference_forward(x, params)
    ref = jax.tree_util.tree_map(jax.block_until_ready, ref)
    for k in ("cls_emb", "seg", "cls"):
        np.testing.assert_allclose(np.asarray(out[k]), np.asarray(ref[k]),
                                   rtol=2e-2, atol=2e-2)

    print("KERNEL_OK")
</pallas_src>

<mosaic_0001>
module attributes {stable_mosaic.version = 11 : i64} {
  func.func @_fused_head_kernel(%arg0: i32, %arg1: i32, %arg2: memref<1x64x8xf32, #tpu.memory_space<vmem>>, %arg3: memref<8x2048xf32, #tpu.memory_space<vmem>>, %arg4: memref<1x2048xf32, #tpu.memory_space<vmem>>, %arg5: memref<2048x128xbf16, #tpu.memory_space<vmem>>, %arg6: memref<1x128xf32, #tpu.memory_space<vmem>>, %arg7: memref<128x128xf32, #tpu.memory_space<vmem>>, %arg8: memref<1x128xf32, #tpu.memory_space<vmem>>, %arg9: memref<1x64x128xf32, #tpu.memory_space<vmem>>, %arg10: memref<1x1x128xf32, #tpu.memory_space<vmem>>, %arg11: memref<1x128xf32, #tpu.memory_space<vmem>>) attributes {dimension_semantics = [#tpu.dimension_semantics<parallel>, #tpu.dimension_semantics<arbitrary>], iteration_bounds = array<i64: 2, 1>, scalar_prefetch = 0 : i64, scratch_operands = 1 : i64, tpu.core_type = #tpu.core_type<tc>, window_params = [{transform_indices = @transform_0, window_bounds = array<i64: 1, 64, 8>}, {pipeline_mode = #tpu.pipeline_mode<synchronous>, transform_indices = @transform_1, window_bounds = array<i64: 8, 2048>}, {pipeline_mode = #tpu.pipeline_mode<synchronous>, transform_indices = @transform_2, window_bounds = array<i64: 1, 2048>}, {pipeline_mode = #tpu.pipeline_mode<synchronous>, transform_indices = @transform_3, window_bounds = array<i64: 2048, 128>}, {pipeline_mode = #tpu.pipeline_mode<synchronous>, transform_indices = @transform_4, window_bounds = array<i64: 1, 128>}, {pipeline_mode = #tpu.pipeline_mode<synchronous>, transform_indices = @transform_5, window_bounds = array<i64: 128, 128>}, {pipeline_mode = #tpu.pipeline_mode<synchronous>, transform_indices = @transform_6, window_bounds = array<i64: 1, 128>}, {transform_indices = @transform_7, window_bounds = array<i64: 1, 64, 128>}, {transform_indices = @transform_8, window_bounds = array<i64: 1, 1, 128>}]} {
    %c0_i32 = arith.constant 0 : i32
    %0 = arith.cmpi eq, %arg1, %c0_i32 : i32
    %1 = arith.extui %0 : i1 to i32
    %c0_i32_0 = arith.constant 0 : i32
    %2 = arith.cmpi ne, %1, %c0_i32_0 : i32
    scf.if %2 {
      %cst_48 = arith.constant 0.000000e+00 : f32
      %64 = vector.broadcast %cst_48 : f32 to vector<1x128xf32>
      %c0_49 = arith.constant 0 : index
      %c0_50 = arith.constant 0 : index
      %65 = vector.load %arg11[%c0_49, %c0_50] : memref<1x128xf32, #tpu.memory_space<vmem>>, vector<1x128xf32>
      tpu.vector_store %arg11[%c0_49, %c0_50], %64 {strides = array<i32>} : memref<1x128xf32, #tpu.memory_space<vmem>>, vector<1x128xf32>,
    } else {
    }
    %c0 = arith.constant 0 : index
    %c0_1 = arith.constant 0 : index
    %c0_2 = arith.constant 0 : index
    %3 = vector.load %arg2[%c0, %c0_1, %c0_2] : memref<1x64x8xf32, #tpu.memory_space<vmem>>, vector<1x64x8xf32>
    %4 = vector.shape_cast %3 : vector<1x64x8xf32> to vector<64x8xf32>
    %cst = arith.constant 0.000000e+00 : f32
    %5 = vector.broadcast %cst : f32 to vector<64x128xf32>
    %c0_3 = arith.constant 0 : index
    %c0_4 = arith.constant 0 : index
    %6 = vector.load %arg3[%c0_3, %c0_4] : memref<8x2048xf32, #tpu.memory_space<vmem>>, vector<8x512xf32>
    %cst_5 = arith.constant dense<0.000000e+00> : vector<64x512xf32>
    %7 = tpu.matmul %4, %6, %cst_5 {dimension_numbers = #tpu.dot_dimension_numbers<[1], [0], [0], [1], [0, 0, 1, 1], [], []>} : vector<64x8xf32>, vector<8x512xf32>, vector<64x512xf32> -> vector<64x512xf32>
    %c0_6 = arith.constant 0 : index
    %c0_7 = arith.constant 0 : index
    %8 = vector.load %arg4[%c0_6, %c0_7] : memref<1x2048xf32, #tpu.memory_space<vmem>>, vector<1x512xf32>
    %9 = vector.broadcast %8 : vector<1x512xf32> to vector<64x512xf32>
    %10 = arith.addf %7, %9 : vector<64x512xf32>
    %cst_8 = arith.constant 0.000000e+00 : f32
    %11 = vector.broadcast %cst_8 : f32 to vector<64x512xf32>
    %12 = arith.maximumf %10, %11 : vector<64x512xf32>
    %13 = arith.truncf %12 : vector<64x512xf32> to vector<64x512xbf16>
    %c0_9 = arith.constant 0 : index
    %c0_10 = arith.constant 0 : index
    %14 = vector.load %arg5[%c0_9, %c0_10] : memref<2048x128xbf16, #tpu.memory_space<vmem>>, vector<512x128xbf16>
    %cst_11 = arith.constant dense<0.000000e+00> : vector<64x128xf32>
    %15 = tpu.matmul %13, %14, %cst_11 {dimension_numbers = #tpu.dot_dimension_numbers<[1], [0], [0], [1], [0, 0, 1, 1], [], []>} : vector<64x512xbf16>, vector<512x128xbf16>, vector<64x128xf32> -> vector<64x128xf32>
    %16 = arith.addf %5, %15 : vector<64x128xf32>
    %c0_12 = arith.constant 0 : index
    %c512 = arith.constant 512 : index
    %17 = vector.load %arg3[%c0_12, %c512] : memref<8x2048xf32, #tpu.memory_space<vmem>>, vector<8x512xf32>
    %cst_13 = arith.constant dense<0.000000e+00> : vector<64x512xf32>
    %18 = tpu.matmul %4, %17, %cst_13 {dimension_numbers = #tpu.dot_dimension_numbers<[1], [0], [0], [1], [0, 0, 1, 1], [], []>} : vector<64x8xf32>, vector<8x512xf32>, vector<64x512xf32> -> vector<64x512xf32>
    %c0_14 = arith.constant 0 : index
    %c512_15 = arith.constant 512 : index
    %19 = vector.load %arg4[%c0_14, %c512_15] : memref<1x2048xf32, #tpu.memory_space<vmem>>, vector<1x512xf32>
    %20 = vector.broadcast %19 : vector<1x512xf32> to vector<64x512xf32>
    %21 = arith.addf %18, %20 : vector<64x512xf32>
    %cst_16 = arith.constant 0.000000e+00 : f32
    %22 = vector.broadcast %cst_16 : f32 to vector<64x512xf32>
    %23 = arith.maximumf %21, %22 : vector<64x512xf32>
    %24 = arith.truncf %23 : vector<64x512xf32> to vector<64x512xbf16>
    %c512_17 = arith.constant 512 : index
    %c0_18 = arith.constant 0 : index
    %25 = vector.load %arg5[%c512_17, %c0_18] : memref<2048x128xbf16, #tpu.memory_space<vmem>>, vector<512x128xbf16>
    %cst_19 = arith.constant dense<0.000000e+00> : vector<64x128xf32>
    %26 = tpu.matmul %24, %25, %cst_19 {dimension_numbers = #tpu.dot_dimension_numbers<[1], [0], [0], [1], [0, 0, 1, 1], [], []>} : vector<64x512xbf16>, vector<512x128xbf16>, vector<64x128xf32> -> vector<64x128xf32>
    %27 = arith.addf %16, %26 : vector<64x128xf32>
    %c0_20 = arith.constant 0 : index
    %c1024 = arith.constant 1024 : index
    %28 = vector.load %arg3[%c0_20, %c1024] : memref<8x2048xf32, #tpu.memory_space<vmem>>, vector<8x512xf32>
    %cst_21 = arith.constant dense<0.000000e+00> : vector<64x512xf32>
    %29 = tpu.matmul %4, %28, %cst_21 {dimension_numbers = #tpu.dot_dimension_numbers<[1], [0], [0], [1], [0, 0, 1, 1], [], []>} : vector<64x8xf32>, vector<8x512xf32>, vector<64x512xf32> -> vector<64x512xf32>
    %c0_22 = arith.constant 0 : index
    %c1024_23 = arith.constant 1024 : index
    %30 = vector.load %arg4[%c0_22, %c1024_23] : memref<1x2048xf32, #tpu.memory_space<vmem>>, vector<1x512xf32>
    %31 = vector.broadcast %30 : vector<1x512xf32> to vector<64x512xf32>
    %32 = arith.addf %29, %31 : vector<64x512xf32>
    %cst_24 = arith.constant 0.000000e+00 : f32
    %33 = vector.broadcast %cst_24 : f32 to vector<64x512xf32>
    %34 = arith.maximumf %32, %33 : vector<64x512xf32>
    %35 = arith.truncf %34 : vector<64x512xf32> to vector<64x512xbf16>
    %c1024_25 = arith.constant 1024 : index
    %c0_26 = arith.constant 0 : index
    %36 = vector.load %arg5[%c1024_25, %c0_26] : memref<2048x128xbf16, #tpu.memory_space<vmem>>, vector<512x128xbf16>
    %cst_27 = arith.constant dense<0.000000e+00> : vector<64x128xf32>
    %37 = tpu.matmul %35, %36, %cst_27 {dimension_numbers = #tpu.dot_dimension_numbers<[1], [0], [0], [1], [0, 0, 1, 1], [], []>} : vector<64x512xbf16>, vector<512x128xbf16>, vector<64x128xf32> -> vector<64x128xf32>
    %38 = arith.addf %27, %37 : vector<64x128xf32>
    %c0_28 = arith.constant 0 : index
    %c1536 = arith.constant 1536 : index
    %39 = vector.load %arg3[%c0_28, %c1536] : memref<8x2048xf32, #tpu.memory_space<vmem>>, vector<8x512xf32>
    %cst_29 = arith.constant dense<0.000000e+00> : vector<64x512xf32>
    %40 = tpu.matmul %4, %39, %cst_29 {dimension_numbers = #tpu.dot_dimension_numbers<[1], [0], [0], [1], [0, 0, 1, 1], [], []>} : vector<64x8xf32>, vector<8x512xf32>, vector<64x512xf32> -> vector<64x512xf32>
    %c0_30 = arith.constant 0 : index
    %c1536_31 = arith.constant 1536 : index
    %41 = vector.load %arg4[%c0_30, %c1536_31] : memref<1x2048xf32, #tpu.memory_space<vmem>>, vector<1x512xf32>
    %42 = vector.broadcast %41 : vector<1x512xf32> to vector<64x512xf32>
    %43 = arith.addf %40, %42 : vector<64x512xf32>
    %cst_32 = arith.constant 0.000000e+00 : f32
    %44 = vector.broadcast %cst_32 : f32 to vector<64x512xf32>
    %45 = arith.maximumf %43, %44 : vector<64x512xf32>
    %46 = arith.truncf %45 : vector<64x512xf32> to vector<64x512xbf16>
    %c1536_33 = arith.constant 1536 : index
    %c0_34 = arith.constant 0 : index
    %47 = vector.load %arg5[%c1536_33, %c0_34] : memref<2048x128xbf16, #tpu.memory_space<vmem>>, vector<512x128xbf16>
    %cst_35 = arith.constant dense<0.000000e+00> : vector<64x128xf32>
    %48 = tpu.matmul %46, %47, %cst_35 {dimension_numbers = #tpu.dot_dimension_numbers<[1], [0], [0], [1], [0, 0, 1, 1], [], []>} : vector<64x512xbf16>, vector<512x128xbf16>, vector<64x128xf32> -> vector<64x128xf32>
    %49 = arith.addf %38, %48 : vector<64x128xf32>
    %c0_36 = arith.constant 0 : index
    %c0_37 = arith.constant 0 : index
    %50 = vector.load %arg6[%c0_36, %c0_37] : memref<1x128xf32, #tpu.memory_space<vmem>>, vector<1x128xf32>
    %51 = vector.broadcast %50 : vector<1x128xf32> to vector<64x128xf32>
    %52 = arith.addf %49, %51 : vector<64x128xf32>
    %c0_38 = arith.constant 0 : index
    %c0_39 = arith.constant 0 : index
    %c0_40 = arith.constant 0 : index
    %53 = vector.load %arg9[%c0_38, %c0_39, %c0_40] : memref<1x64x128xf32, #tpu.memory_space<vmem>>, vector<1x64x128xf32>
    %54 = vector.shape_cast %53 : vector<1x64x128xf32> to vector<64x128xf32>
    %55 = vector.shape_cast %52 : vector<64x128xf32> to vector<1x64x128xf32>
    tpu.vector_store %arg9[%c0_38, %c0_39, %c0_40], %55 {strides = array<i32>} : memref<1x64x128xf32, #tpu.memory_space<vmem>>, vector<1x64x128xf32>,
    %c0_41 = arith.constant 0 : index
    %c0_42 = arith.constant 0 : index
    %56 = vector.load %arg11[%c0_41, %c0_42] : memref<1x128xf32, #tpu.memory_space<vmem>>, vector<1x128xf32>
    %cst_43 = arith.constant dense<0.000000e+00> : vector<128xf32>
    %57 = vector.multi_reduction <add>, %52, %cst_43 [0] : vector<64x128xf32> to vector<128xf32>
    %58 = vector.shape_cast %57 : vector<128xf32> to vector<1x128xf32>
    %59 = arith.addf %56, %58 : vector<1x128xf32>
    %c0_44 = arith.constant 0 : index
    %c0_45 = arith.constant 0 : index
    %60 = vector.load %arg11[%c0_44, %c0_45] : memref<1x128xf32, #tpu.memory_space<vmem>>, vector<1x128xf32>
    tpu.vector_store %arg11[%c0_44, %c0_45], %59 {strides = array<i32>} : memref<1x128xf32, #tpu.memory_space<vmem>>, vector<1x128xf32>,
    %c0_i32_46 = arith.constant 0 : i32
    %61 = arith.cmpi eq, %arg1, %c0_i32_46 : i32
    %62 = arith.extui %61 : i1 to i32
    %c0_i32_47 = arith.constant 0 : i32
    %63 = arith.cmpi ne, %62, %c0_i32_47 : i32
    scf.if %63 {
      %c0_48 = arith.constant 0 : index
      %c0_49 = arith.constant 0 : index
      %64 = vector.load %arg11[%c0_48, %c0_49] : memref<1x128xf32, #tpu.memory_space<vmem>>, vector<1x128xf32>
      %cst_50 = arith.constant 1.562500e-02 : f32
      %65 = vector.broadcast %cst_50 : f32 to vector<1x128xf32>
      %66 = arith.mulf %64, %65 : vector<1x128xf32>
      %c0_51 = arith.constant 0 : index
      %c0_52 = arith.constant 0 : index
      %67 = vector.load %arg7[%c0_51, %c0_52] : memref<128x128xf32, #tpu.memory_space<vmem>>, vector<128x128xf32>
      %cst_53 = arith.constant dense<0.000000e+00> : vector<1x128xf32>
      %68 = tpu.matmul %66, %67, %cst_53 {dimension_numbers = #tpu.dot_dimension_numbers<[1], [0], [0], [1], [0, 0, 1, 1], [], []>} : vector<1x128xf32>, vector<128x128xf32>, vector<1x128xf32> -> vector<1x128xf32>
      %c0_54 = arith.constant 0 : index
      %c0_55 = arith.constant 0 : index
      %69 = vector.load %arg8[%c0_54, %c0_55] : memref<1x128xf32, #tpu.memory_space<vmem>>, vector<1x128xf32>
      %70 = arith.addf %68, %69 : vector<1x128xf32>
      %c0_56 = arith.constant 0 : index
      %c0_57 = arith.constant 0 : index
      %c0_58 = arith.constant 0 : index
      %71 = vector.load %arg10[%c0_56, %c0_57, %c0_58] : memref<1x1x128xf32, #tpu.memory_space<vmem>>, vector<1x1x128xf32>
      %72 = vector.shape_cast %71 : vector<1x1x128xf32> to vector<1x128xf32>
      %73 = vector.shape_cast %70 : vector<1x128xf32> to vector<1x1x128xf32>
      tpu.vector_store %arg10[%c0_56, %c0_57, %c0_58], %73 {strides = array<i32>} : memref<1x1x128xf32, #tpu.memory_space<vmem>>, vector<1x1x128xf32>,
    } else {
    }
    return
  }
  func.func @transform_0(%arg0: i32, %arg1: i32) -> (i32, i32, i32) {
    %c0_i32 = arith.constant 0 : i32
    %c0_i32_0 = arith.constant 0 : i32
    return %arg0, %arg1, %c0_i32 : i32, i32, i32
  }
  func.func @transform_1(%arg0: i32, %arg1: i32) -> (i32, i32) {
    %c0_i32 = arith.constant 0 : i32
    %c0_i32_0 = arith.constant 0 : i32
    %c0_i32_1 = arith.constant 0 : i32
    return %c0_i32, %c0_i32_0 : i32, i32
  }
  func.func @transform_2(%arg0: i32, %arg1: i32) -> (i32, i32) {
    %c0_i32 = arith.constant 0 : i32
    %c0_i32_0 = arith.constant 0 : i32
    %c0_i32_1 = arith.constant 0 : i32
    return %c0_i32, %c0_i32_0 : i32, i32
  }
  func.func @transform_3(%arg0: i32, %arg1: i32) -> (i32, i32) {
    %c0_i32 = arith.constant 0 : i32
    %c0_i32_0 = arith.constant 0 : i32
    %c0_i32_1 = arith.constant 0 : i32
    return %c0_i32, %c0_i32_0 : i32, i32
  }
  func.func @transform_4(%arg0: i32, %arg1: i32) -> (i32, i32) {
    %c0_i32 = arith.constant 0 : i32
    %c0_i32_0 = arith.constant 0 : i32
    %c0_i32_1 = arith.constant 0 : i32
    return %c0_i32, %c0_i32_0 : i32, i32
  }
  func.func @transform_5(%arg0: i32, %arg1: i32) -> (i32, i32) {
    %c0_i32 = arith.constant 0 : i32
    %c0_i32_0 = arith.constant 0 : i32
    %c0_i32_1 = arith.constant 0 : i32
    return %c0_i32, %c0_i32_0 : i32, i32
  }
  func.func @transform_6(%arg0: i32, %arg1: i32) -> (i32, i32) {
    %c0_i32 = arith.constant 0 : i32
    %c0_i32_0 = arith.constant 0 : i32
    %c0_i32_1 = arith.constant 0 : i32
    return %c0_i32, %c0_i32_0 : i32, i32
  }
  func.func @transform_7(%arg0: i32, %arg1: i32) -> (i32, i32, i32) {
    %c0_i32 = arith.constant 0 : i32
    %c0_i32_0 = arith.constant 0 : i32
    return %arg0, %arg1, %c0_i32 : i32, i32, i32
  }
  func.func @transform_8(%arg0: i32, %arg1: i32) -> (i32, i32, i32) {
    %c0_i32 = arith.constant 0 : i32
    %c0_i32_0 = arith.constant 0 : i32
    %c0_i32_1 = arith.constant 0 : i32
    return %arg0, %c0_i32, %c0_i32_0 : i32, i32, i32
  }
}

</mosaic_0001>

<bundles_post_ra>
// kernel: tpu_custom_call.1
= control target key start
LH: loop header
LB: loop body
LE: loop exit
PB: predicated region body
PF: predicated region fallthrough
CT: control target
= control target key end

     0   :  { %s5118_s0 = inlined_call_operand.vmem [shape: f32[2,64,8], index: 0, kind: input, shape index: {}]   ;;  %s5119_s1 = inlined_call_operand.vmem [shape: f32[8,2048], index: 1, kind: input, shape index: {}]   ;;  %s5120_s2 = inlined_call_operand.vmem [shape: f32[1,2048], index: 2, kind: input, shape index: {}]   ;;  %s5121_s3 = inlined_call_operand.hbm [shape: bf16[2048,128], index: 3, kind: input, shape index: {}]   ;;  %s5122_s4 = inlined_call_operand.vmem [shape: f32[1,128], index: 4, kind: input, shape index: {}]   ;;  %s5123_s5 = inlined_call_operand.hbm [shape: f32[128,128], index: 5, kind: input, shape index: {}]   ;;  %s5124_s6 = inlined_call_operand.vmem [shape: f32[1,128], index: 6, kind: input, shape index: {}]   ;;  %s5125_s7 = inlined_call_operand.hbm [shape: f32[2,64,128], index: 7, kind: output, shape index: {0}]   ;;  %s5126_s8 = inlined_call_operand.hbm [shape: f32[2,1,128], index: 8, kind: output, shape index: {1}]  }
   0x1   :  { %5132 = sst [smem:[#allocation31_spill]] %s5118_s0 }
   0x2   :  { %5133 = sst [smem:[#allocation32_spill]] %s5119_s1 }
   0x3   :  { %5134 = sst [smem:[#allocation33_spill]] %s5121_s3 }
   0x4   :  { %14 = vsyncpa [#allocation4], 0 }
   0x5   :  { %15 = vsyncpa [#allocation7], 0 }
   0x6   :  { %16 = vsyncpa [#allocation5], 0 }
   0x7   :  { %18 = vsyncpa [#allocation5 + $0x1], 0 }
   0x8   :  { %19 = vsyncpa [#allocation10], 0 }
   0x9   :  { %21 = vsyncpa [#allocation10 + $0x1], 0  ;;  %s4186_s27 = smov 0   ;;  %s4188_s28 = smov 0  }
   0xa   :  { %s4190_s29 = smov 0   ;;  %s4192_s30 = smov 0  }
   0xb   :  { %s4194_s9 = smov 0   ;;  %s4196_s10 = smov 0  }
   0xc LB: > { %s3068_s11 = sadd.s32 4294967295, %s4130_s10   ;;  %s3069_s12 = sadd.s32 4294967294, %s4130_s10   ;;  %s4130_s10 = sphi %s4196_s10, %s27_s10   ;;  %s4126_s9 = sphi %s4194_s9, %s5182_s9   ;;  %s4122_s30 = sphi %s4192_s30, %s5181_s30   ;;  %s4118_s29 = sphi %s4190_s29, %s5180_s29   ;;  %s4114_s28 = sphi %s4188_s28, %s5179_s28   ;;  %s4110_s27 = sphi %s4186_s27, %s5178_s27  }
   0xd   : > { %s39_s13 = sadd.s32 1, %s4126_s9  ;;  %s202_s14 = sadd.s32 1, %s4118_s29 }
   0xe   : > { %p41_p0 = scmp.ge.s32.totalorder %s39_s13, 2  ;;  %p212_p1 = scmp.ne.s32.totalorder %s4118_s29, %s4114_s28 }
   0xf   : > { %p213_p2 = scmp.eq.s32.totalorder %s3068_s11, 1  ;;  %p218_p3 = scmp.ne.s32.totalorder %s4114_s28, %s4110_s27 }
  0x10   : > { %s5184_s13 = smov (%p41_p0, %s39_s13), 0  ;;  %p219_p5 = scmp.eq.s32.totalorder %s3069_s12, 1 }
  0x11   : > { %5135 = sst [smem:[#allocation15_spill]] %s5184_s13  ;;  %p4226_p4 = por %p213_p2, %p212_p1 }
  0x12   : > { %s197_s16 = ssub.s32 %s4126_s9, %s5184_s13  ;;  %p3070_p6 = scmp.ge.s32.totalorder %s4130_s10, 1 }
  0x13   : > { %p200_p7 = scmp.eq.s32.totalorder %s197_s16, 0  ;;  %p4233_p8 = por %p219_p5, %p218_p3 }
  0x14   : > { %p252_p9 = scmp.lt.s32.totalorder %s4130_s10, 3  ;;  %p4245_p11 = scmp.eq.s32.totalorder %s3068_s11, 0 }
  0x15   : > { %s4239_s18 = scalar_select %p200_p7, %s4118_s29, %s202_s14  }
  0x16   : > { %p4241_p10 = pnand %p3070_p6, %p252_p9  ;;  %s5140_s3 = sld [smem:[#allocation33_spill]] }
  0x17   : > { %s4132_s24 = smov [#allocation3]   ;;  %s286_s11 = sshll.u32 %s5123_s5, 4  ;;  %s287_s11 = int_to_ptr.hbm [resolvable:$true] %s286_s11 }
  0x18   : > { %p3867_p12 = pneg %p4241_p10  ;;  %s271_s25 = sshll.u32 %s4132_s24, 4  ;;  %s272_s25 = int_to_ptr.vmem [resolvable:$true] %s271_s25 }
  0x19   : > { %s4133_s14 = smov 64   ;;  %s4134_s16 = smov 4  }
  0x1a   : > { %p3868_p13 = pnand %p4245_p11, %p3867_p12  ;;  %s4135_s13 = smov [#allocation6]  }
  0x1b   : > { %s288_s21 = sshll.u32 %s4135_s13, 4  ;;  %s4136_s22 = smov 128   ;;  %s289_s21 = int_to_ptr.vmem [resolvable:$true] %s288_s21 }
  0x1c   : > { %s269_s23 = sshll.u32 %s5140_s3, 4  ;;  %s4137_s3 = smov 8   ;;  %s270_s23 = int_to_ptr.hbm [resolvable:$true] %s269_s23 }
  0x1d   : > { %3870 = dma.hbm_to_vmem [thread:$0]  (!%p3868_p13), %s270_s23, 16384, %s272_s25, [#allocation4], %s4133_s14, %s4133_s14, %s4134_s16  }
  0x1e   : > { %3873 = dma.hbm_to_vmem [thread:$0]  (!%p3868_p13), %s287_s11, 2048, %s289_s21, [#allocation7], %s4136_s22, %s4136_s22, %s4137_s3  }
  0x1f   : > { %320 = sbr.rel (%p4241_p10) target bundleno = 1097 (0x449), region = 48 }
  0x24   : > { %4093 = dma.done.wait (%p4245_p11), [#allocation4], 16384  }
  0x25   : > { %4095 = vsyncadd (%p4245_p11), [#allocation4], 4294950912 }
  0x26   : > { %4097 = dma.done.wait (%p4245_p11), [#allocation7], 2048  }
  0x27   : > { %4099 = vsyncadd (%p4245_p11), [#allocation7], 4294965248  ;;  %p369_p0 = scmp.lt.s32.totalorder %s4122_s30, 1  ;;  %s5141_s0 = sld [smem:[#allocation31_spill]]  ;;  %vm406_vm0 = vcmask 64512   ;;  %v3781_v16 = vld [vmem:[#allocation3 + $0x1b8] sm:$0xff] }
  0x28   : > { %s5142_s1 = sld [smem:[#allocation32_spill]]  ;;  %v3789_v17 = vld [vmem:[#allocation3 + $0x1f8] sm:$0xff]  ;;  %v3780_v18 = vld [vmem:[#allocation3 + $0x1b0] sm:$0xff]  ;;  %v3779_v24 = vld [vmem:[#allocation3 + $0x1a8] sm:$0xff]  ;;  %s5000_s25 = sand.u32 1, %s4114_s28  }
  0x29   : > { %s370_s13 = scalar_select %p369_p0, %s4122_s30, 1  ;;  %v3788_v21 = vld [vmem:[#allocation3 + $0x1f0] sm:$0xff]  ;;  %v3765_v22 = vld [vmem:[#allocation3 + $0x138] sm:$0xff]  ;;  %v3787_v29 = vld [vmem:[#allocation3 + $0x1e8] sm:$0xff] }
  0x2a   : > { %v3773_v23 = vld [vmem:[#allocation3 + $0x178] sm:$0xff]  ;;  %v3764_v30 = vld [vmem:[#allocation3 + $0x130] sm:$0xff]  ;;  %v3778_v32 = vld [vmem:[#allocation3 + $0x1a0] sm:$0xff]  ;;  %s3077_s26 = sshll.u32 %s5000_s25, 6  ;;  %s3854_s14 = sshll.u32 %s4122_s30, 6 }
  0x2b   : > { %s3725_s3 = sshll.u32 %s370_s13, 6  ;;  %v3772_v31 = vld [vmem:[#allocation3 + $0x170] sm:$0xff]  ;;  %v3786_v37 = vld [vmem:[#allocation3 + $0x1e0] sm:$0xff]  ;;  %v3763_v38 = vld [vmem:[#allocation3 + $0x128] sm:$0xff]  ;;  %s5016_s20 = scalar_lea.vmem [#allocation8], %s3077_s26 }
  0x2c   : > { %v3771_v39 = vld [vmem:[#allocation3 + $0x168] sm:$0xff]  ;;  %v3777_v40 = vld [vmem:[#allocation3 + $0x198] sm:$0xff]  ;;  %v3762_v46 = vld [vmem:[#allocation3 + $0x120] sm:$0xff]  ;;  %s2922_s22 = scalar_lea.hbm %s5125_s7, %s3854_s14  ;;  %s2923_s13 = sshll.u32 %s5016_s20, 4  ;;  %s2924_s13 = int_to_ptr.vmem [resolvable:$true] %s2923_s13 }
  0x2d   : > { %s4274_s24 = scalar_lea.vmem %s5141_s0, %s3725_s3  ;;  %v3785_v45 = vld [vmem:[#allocation3 + $0x1d8] sm:$0xff]  ;;  %v3770_v47 = vld [vmem:[#allocation3 + $0x160] sm:$0xff]  ;;  %v3776_v48 = vld [vmem:[#allocation3 + $0x190] sm:$0xff]  ;;  %s2925_s3 = sshll.u32 %s2922_s22, 4  ;;  %s2926_s3 = int_to_ptr.hbm [resolvable:$true] %s2925_s3 }
  0x2e   : > { %v392_v0 = vld [vmem:[%s5142_s1] sm:$0xff]  ;;  %v393_v1 = vld [vmem:[%s5142_s1 + $0x8] sm:$0xff]  ;;  %v394_v2 = vld [vmem:[%s5142_s1 + $0x10] sm:$0xff]  ;;  %s2905_s23 = scalar_lea.sflag [#allocation5], %s5000_s25  ;;  %s4032_s11 = scalar_lea.hbm %s5125_s7, 128 }
  0x2f   : > { %446 = vmatpush.msra.mxu0 %v392_v0  ;;  %487 = vmatpush.msra.mxu1 %v393_v1  ;;  %v395_v3 = vld [vmem:[%s5142_s1 + $0x18] sm:$0xff]  ;;  %v4289_v4 = vld [vmem:[%s4274_s24] sm:$0xff]  ;;  %v709_v5 = vld [vmem:[%s5142_s1 + $0x30] sm:$0xff] }
  0x30   : > { %528 = vmatpush.msra.mxu2 %v394_v2  ;;  %569 = vmatpush.msra.mxu3 %v395_v3  ;;  %v710_v6 = vld [vmem:[%s5142_s1 + $0x38] sm:$0xff]  ;;  %v707_v7 = vld [vmem:[%s5142_s1 + $0x20] sm:$0xff]  ;;  %v708_v8 = vld [vmem:[%s5142_s1 + $0x28] sm:$0xff] }
  0x31   : > { %3080 = vmatmul.msk.f32.vlgmr.msra.gmra.mxu0 %vm406_vm0, %v4289_v4  ;;  %3088 = vmatmul.msk.f32.vlgmr.msra.gmra.mxu1 %vm406_vm0, %v4289_v4  ;;  %v4312_v9 = vld [vmem:[%s4274_s24 + $0x8] sm:$0xff]  ;;  %v4323_v10 = vld [vmem:[%s4274_s24 + $0x10] sm:$0xff]  ;;  %v4334_v11 = vld [vmem:[%s4274_s24 + $0x18] sm:$0xff] }
  0x32   : > { %3096 = vmatmul.msk.f32.vlgmr.msra.gmra.mxu2 %vm406_vm0, %v4289_v4  ;;  %3104 = vmatmul.msk.f32.vlgmr.msra.gmra.mxu3 %vm406_vm0, %v4289_v4  ;;  %v4345_v12 = vld [vmem:[%s4274_s24 + $0x20] sm:$0xff]  ;;  %v4356_v13 = vld [vmem:[%s4274_s24 + $0x28] sm:$0xff]  ;;  %v4367_v14 = vld [vmem:[%s4274_s24 + $0x30] sm:$0xff] }
  0x33   : > { %818 = vmatpush.msrb.mxu2 %v709_v5  ;;  %859 = vmatpush.msrb.mxu3 %v710_v6  ;;  %5143 = vst [vmem:[#allocation16_spill] sm:$0xff] %v4367_v14  ;;  %v4378_v15 = vld [vmem:[%s4274_s24 + $0x38] sm:$0xff]  ;;  %v3775_v58 = vld [vmem:[#allocation3 + $0x188] sm:$0xff]  ;;  %v3758_v2 = vld [vmem:[#allocation3 + $0x100] sm:$0xff] }
  0x34   : > { %736 = vmatpush.msrb.mxu0 %v707_v7  ;;  %777 = vmatpush.msrb.mxu1 %v708_v8  ;;  %5144 = vst [vmem:[#allocation17_spill] sm:$0xff] %v4378_v15  ;;  %v3761_v51 = vld [vmem:[#allocation3 + $0x118] sm:$0xff]  ;;  %v3784_v55 = vld [vmem:[#allocation3 + $0x1d0] sm:$0xff]  ;;  %v3759_v61 = vld [vmem:[#allocation3 + $0x108] sm:$0xff] }
  0x35   : > { %1247 = vmatpush.bf16.msra.mxu2 %v3781_v16  ;;  %1276 = vmatpush.bf16.msra.mxu3 %v3789_v17  ;;  %v3769_v52 = vld [vmem:[#allocation3 + $0x158] sm:$0xff]  ;;  %v3760_v56 = vld [vmem:[#allocation3 + $0x110] sm:$0xff]  ;;  %v3767_v62 = vld [vmem:[#allocation3 + $0x148] sm:$0xff] }
  0x36   : > { %1189 = vmatpush.bf16.msra.mxu0 %v3765_v22  ;;  %1218 = vmatpush.bf16.msra.mxu1 %v3773_v23  ;;  %v3768_v57 = vld [vmem:[#allocation3 + $0x150] sm:$0xff]  ;;  %v3783_v1 = vld [vmem:[#allocation3 + $0x1c8] sm:$0xff]  ;;  %v3766_v3 = vld [vmem:[#allocation3 + $0x140] sm:$0xff] }
  0x37   : > { %v3774_v5 = vld [vmem:[#allocation3 + $0x180] sm:$0xff] }
  0x38   : > { %v3782_v17 = vld [vmem:[#allocation3 + $0x1c0] sm:$0xff] }
  0x39   : > { %3081 = vmatmul.msk.f32.gmra.mxu0 %vm406_vm0, %v4312_v9  ;;  %3089 = vmatmul.msk.f32.gmra.mxu1 %vm406_vm0, %v4312_v9 }
  0x3a   : > { %3097 = vmatmul.msk.f32.gmra.mxu2 %vm406_vm0, %v4312_v9  ;;  %3105 = vmatmul.msk.f32.gmra.mxu3 %vm406_vm0, %v4312_v9 }
  0x3b   : > { %1248 = vmatpush.bf16.msra.mxu2 %v3780_v18  ;;  %1277 = vmatpush.bf16.msra.mxu3 %v3788_v21  ;;  %v3749_v18 = vld [vmem:[#allocation3 + $0xb8] sm:$0xff] }
  0x3c   : > { %1190 = vmatpush.bf16.msra.mxu0 %v3764_v30  ;;  %1219 = vmatpush.bf16.msra.mxu1 %v3772_v31  ;;  %v3748_v30 = vld [vmem:[#allocation3 + $0xb0] sm:$0xff] }
  0x3f   : > { %1249 = vmatpush.bf16.msra.mxu2 %v3779_v24  ;;  %1278 = vmatpush.bf16.msra.mxu3 %v3787_v29  ;;  %v3757_v29 = vld [vmem:[#allocation3 + $0xf8] sm:$0xff] }
  0x40   : > { %1191 = vmatpush.bf16.msra.mxu0 %v3763_v38  ;;  %1220 = vmatpush.bf16.msra.mxu1 %v3771_v39 }
  0x41   : > { %3082 = vmatmul.msk.f32.gmra.mxu0 %vm406_vm0, %v4323_v10  ;;  %3090 = vmatmul.msk.f32.gmra.mxu1 %vm406_vm0, %v4323_v10 }
  0x42   : > { %3098 = vmatmul.msk.f32.gmra.mxu2 %vm406_vm0, %v4323_v10  ;;  %3106 = vmatmul.msk.f32.gmra.mxu3 %vm406_vm0, %v4323_v10 }
  0x43   : > { %1250 = vmatpush.bf16.msra.mxu2 %v3778_v32  ;;  %1279 = vmatpush.bf16.msra.mxu3 %v3786_v37  ;;  %v711_v37 = vld [vmem:[%s5120_s2 + $0x4] sm:$0xf] }
  0x44   : > { %1192 = vmatpush.bf16.msra.mxu0 %v3762_v46  ;;  %1221 = vmatpush.bf16.msra.mxu1 %v3770_v47  ;;  %v3756_v46 = vld [vmem:[#allocation3 + $0xf0] sm:$0xff] }
  0x47   : > { %1251 = vmatpush.bf16.msra.mxu2 %v3777_v40  ;;  %1280 = vmatpush.bf16.msra.mxu3 %v3785_v45  ;;  %v4519_v40 = vperm.slane %v711_v37, 0  ;;  %v4521_v45 = vperm.slane %v711_v37, 1 }
  0x48   : > { %1193 = vmatpush.bf16.msra.mxu0 %v3761_v51  ;;  %1222 = vmatpush.bf16.msra.mxu1 %v3769_v52  ;;  %v3733_v51 = vld [vmem:[#allocation3 + $0x38] sm:$0xff] }
  0x49   : > { %3083 = vmatmul.msk.f32.gmra.mxu0 %vm406_vm0, %v4334_v11  ;;  %3091 = vmatmul.msk.f32.gmra.mxu1 %vm406_vm0, %v4334_v11  ;;  %v3741_v52 = vld [vmem:[#allocation3 + $0x78] sm:$0xff] }
  0x4a   : > { %3099 = vmatmul.msk.f32.gmra.mxu2 %vm406_vm0, %v4334_v11  ;;  %3107 = vmatmul.msk.f32.gmra.mxu3 %vm406_vm0, %v4334_v11 }
  0x4b   : > { %1252 = vmatpush.bf16.msra.mxu2 %v3776_v48  ;;  %1281 = vmatpush.bf16.msra.mxu3 %v3784_v55  ;;  %v3747_v55 = vld [vmem:[#allocation3 + $0xa8] sm:$0xff] }
  0x4c   : > { %1194 = vmatpush.bf16.msra.mxu0 %v3760_v56  ;;  %1223 = vmatpush.bf16.msra.mxu1 %v3768_v57 }
  0x4f   : > { %1253 = vmatpush.bf16.msra.mxu2 %v3775_v58  ;;  %1282 = vmatpush.bf16.msra.mxu3 %v3783_v1 }
  0x50   : > { %1195 = vmatpush.bf16.msra.mxu0 %v3759_v61  ;;  %1224 = vmatpush.bf16.msra.mxu1 %v3767_v62 }
  0x51   : > { %3084 = vmatmul.msk.f32.gmra.mxu0 %vm406_vm0, %v4345_v12  ;;  %3092 = vmatmul.msk.f32.gmra.mxu1 %vm406_vm0, %v4345_v12 }
  0x52   : > { %3100 = vmatmul.msk.f32.gmra.mxu2 %vm406_vm0, %v4345_v12  ;;  %3108 = vmatmul.msk.f32.gmra.mxu3 %vm406_vm0, %v4345_v12 }
  0x53   : > { %1254 = vmatpush.bf16.msra.mxu2 %v3774_v5  ;;  %1283 = vmatpush.bf16.msra.mxu3 %v3782_v17  ;;  %v4527_v5 = vperm.slane %v711_v37, 2  ;;  %v4529_v17 = vperm.slane %v711_v37, 3 }
  0x54   : > { %1196 = vmatpush.bf16.msra.mxu0 %v3758_v2  ;;  %1225 = vmatpush.bf16.msra.mxu1 %v3766_v3 }
  0x59   : > { %3085 = vmatmul.msk.f32.gmra.mxu0 %vm406_vm0, %v4356_v13  ;;  %3093 = vmatmul.msk.f32.gmra.mxu1 %vm406_vm0, %v4356_v13 }
  0x5a   : > { %3101 = vmatmul.msk.f32.gmra.mxu2 %vm406_vm0, %v4356_v13  ;;  %3109 = vmatmul.msk.f32.gmra.mxu3 %vm406_vm0, %v4356_v13 }
  0x61   : > { %3086 = vmatmul.msk.f32.gmra.mxu0 %vm406_vm0, %v4367_v14  ;;  %3094 = vmatmul.msk.f32.gmra.mxu1 %vm406_vm0, %v4367_v14 }
  0x62   : > { %3102 = vmatmul.msk.f32.gmra.mxu2 %vm406_vm0, %v4367_v14  ;;  %3110 = vmatmul.msk.f32.gmra.mxu3 %vm406_vm0, %v4367_v14 }
  0x69   : > { %3087 = vmatmul.msk.f32.gmra.mxu0 %vm406_vm0, %v4378_v15  ;;  %3095 = vmatmul.msk.f32.gmra.mxu1 %vm406_vm0, %v4378_v15 }
  0x6a   : > { %3103 = vmatmul.msk.f32.gmra.mxu2 %vm406_vm0, %v4378_v15  ;;  %3111 = vmatmul.msk.f32.gmra.mxu3 %vm406_vm0, %v4378_v15 }
  0x71   : > { %3112 = vmatmul.msk.f32.vlgmr.msrb.gmra.mxu0 %vm406_vm0, %v4289_v4  ;;  %3120 = vmatmul.msk.f32.vlgmr.msrb.gmra.mxu1 %vm406_vm0, %v4289_v4 }
  0x72   : > { %3128 = vmatmul.msk.f32.vlgmr.msrb.gmra.mxu2 %vm406_vm0, %v4289_v4  ;;  %3136 = vmatmul.msk.f32.vlgmr.msrb.gmra.mxu3 %vm406_vm0, %v4289_v4 }
  0x73   : > { %1555 = vmatpush.bf16.msrb.mxu2 %v3749_v18  ;;  %1584 = vmatpush.bf16.msrb.mxu3 %v3757_v29  ;;  %v3755_v18 = vld [vmem:[#allocation3 + $0xe8] sm:$0xff] }
  0x74   : > { %1497 = vmatpush.bf16.msrb.mxu0 %v3733_v51  ;;  %1526 = vmatpush.bf16.msrb.mxu1 %v3741_v52 }
  0x77   : > { %1556 = vmatpush.bf16.msrb.mxu2 %v3748_v30  ;;  %1585 = vmatpush.bf16.msrb.mxu3 %v3756_v46  ;;  %v3746_v46 = vld [vmem:[#allocation3 + $0xa0] sm:$0xff] }
  0x79   : > { %3113 = vmatmul.msk.f32.gmra.mxu0 %vm406_vm0, %v4312_v9  ;;  %3121 = vmatmul.msk.f32.gmra.mxu1 %vm406_vm0, %v4312_v9 }
  0x7a   : > { %3129 = vmatmul.msk.f32.gmra.mxu2 %vm406_vm0, %v4312_v9  ;;  %3137 = vmatmul.msk.f32.gmra.mxu3 %vm406_vm0, %v4312_v9 }
  0x7b   : > { %1557 = vmatpush.bf16.msrb.mxu2 %v3747_v55  ;;  %1586 = vmatpush.bf16.msrb.mxu3 %v3755_v18 }
  0x7f   : > { %1558 = vmatpush.bf16.msrb.mxu2 %v3746_v46  ;;  %v3731_v46 = vld [vmem:[#allocation3 + $0x28] sm:$0xff] }
  0x81   : > { %3114 = vmatmul.msk.f32.gmra.mxu0 %vm406_vm0, %v4323_v10  ;;  %3122 = vmatmul.msk.f32.gmra.mxu1 %vm406_vm0, %v4323_v10 }
  0x82   : > { %3130 = vmatmul.msk.f32.gmra.mxu2 %vm406_vm0, %v4323_v10  ;;  %3138 = vmatmul.msk.f32.gmra.mxu3 %vm406_vm0, %v4323_v10 }
  0x89   : > { %3115 = vmatmul.msk.f32.gmra.mxu0 %vm406_vm0, %v4334_v11  ;;  %3123 = vmatmul.msk.f32.gmra.mxu1 %vm406_vm0, %v4334_v11 }
  0x8a   : > { %3131 = vmatmul.msk.f32.gmra.mxu2 %vm406_vm0, %v4334_v11  ;;  %3139 = vmatmul.msk.f32.gmra.mxu3 %vm406_vm0, %v4334_v11 }
  0x91   : > { %3116 = vmatmul.msk.f32.gmra.mxu0 %vm406_vm0, %v4345_v12  ;;  %3124 = vmatmul.msk.f32.gmra.mxu1 %vm406_vm0, %v4345_v12 }
  0x92   : > { %3132 = vmatmul.msk.f32.gmra.mxu2 %vm406_vm0, %v4345_v12  ;;  %3140 = vmatmul.msk.f32.gmra.mxu3 %vm406_vm0, %v4345_v12 }
  0x99   : > { %3117 = vmatmul.msk.f32.gmra.mxu0 %vm406_vm0, %v4356_v13  ;;  %3125 = vmatmul.msk.f32.gmra.mxu1 %vm406_vm0, %v4356_v13 }
  0x9a   : > { %3133 = vmatmul.msk.f32.gmra.mxu2 %vm406_vm0, %v4356_v13  ;;  %3141 = vmatmul.msk.f32.gmra.mxu3 %vm406_vm0, %v4356_v13 }
  0xa1   : > { %3118 = vmatmul.msk.f32.gmra.mxu0 %vm406_vm0, %v4367_v14  ;;  %3126 = vmatmul.msk.f32.gmra.mxu1 %vm406_vm0, %v4367_v14 }
  0xa2   : > { %3134 = vmatmul.msk.f32.gmra.mxu2 %vm406_vm0, %v4367_v14  ;;  %3142 = vmatmul.msk.f32.gmra.mxu3 %vm406_vm0, %v4367_v14 }
  0xa9   : > { %3119 = vmatmul.msk.f32.gmra.mxu0 %vm406_vm0, %v4378_v15  ;;  %3127 = vmatmul.msk.f32.gmra.mxu1 %vm406_vm0, %v4378_v15 }
  0xaa   : > { %3135 = vmatmul.msk.f32.gmra.mxu2 %vm406_vm0, %v4378_v15  ;;  %3143 = vmatmul.msk.f32.gmra.mxu3 %vm406_vm0, %v4378_v15 }
  0xae   : > { %v4452_v19 = vpop.f32.mrf.mxu0  ;;  %v4454_v20 = vpop.f32.mrf.mxu1 }
  0xb5   : > { %v4456_v25 = vpop.f32.mrf.mxu2  ;;  %v4458_v26 = vpop.f32.mrf.mxu3 }
  0xb6   : > { %v4460_v27 = vpop.f32.mrf.mxu0  ;;  %v4462_v28 = vpop.f32.mrf.mxu1 }
  0xbd   : > { %v4464_v33 = vpop.f32.mrf.mxu2  ;;  %v4466_v34 = vpop.f32.mrf.mxu3 }
  0xbe   : > { %v4468_v35 = vpop.f32.mrf.mxu0  ;;  %v4470_v36 = vpop.f32.mrf.mxu1 }
  0xc5   : > { %v4472_v41 = vpop.f32.mrf.mxu2  ;;  %v4474_v42 = vpop.f32.mrf.mxu3 }
  0xc6   : > { %v4476_v43 = vpop.f32.mrf.mxu0  ;;  %v4478_v44 = vpop.f32.mrf.mxu1 }
  0xcd   : > { %v4480_v49 = vpop.f32.mrf.mxu2  ;;  %v4482_v50 = vpop.f32.mrf.mxu3 }
  0xce   : > { %v4484_v53 = vpop.f32.mrf.mxu0  ;;  %v4486_v54 = vpop.f32.mrf.mxu1 }
  0xd5   : > { %v4488_v59 = vpop.f32.mrf.mxu2  ;;  %v4490_v60 = vpop.f32.mrf.mxu3 }
  0xd6   : > { %v4492_v63 = vpop.f32.mrf.mxu0  ;;  %v4494_v0 = vpop.f32.mrf.mxu1 }
  0xdd   : > { %v4496_v6 = vpop.f32.mrf.mxu2  ;;  %v4498_v7 = vpop.f32.mrf.mxu3 }
  0xde   : > { %v4500_v8 = vpop.f32.mrf.mxu0  ;;  %v4502_v16 = vpop.f32.mrf.mxu1 }
  0xe5   : > { %v4504_v21 = vpop.f32.mrf.mxu2  ;;  %v4506_v22 = vpop.f32.mrf.mxu3 }
  0xe6   : > { %v4508_v23 = vpop.f32.mrf.mxu0  ;;  %v4510_v24 = vpop.f32.mrf.mxu1 }
  0xed   : > { %v4512_v31 = vpop.f32.mrf.mxu2  ;;  %v4514_v32 = vpop.f32.mrf.mxu3 }
  0xee   : > { %v738_v38 = vpop.f32.mrf.mxu0  ;;  %v779_v39 = vpop.f32.mrf.mxu1 }
  0xef   : > { %v739_v47 = vadd.f32 %v738_v38, %v4519_v40  ;;  %v780_v48 = vadd.f32 %v779_v39, %v4521_v45  ;;  %v3732_v38 = vld [vmem:[#allocation3 + $0x30] sm:$0xff] }
  0xf0   : > { %v3740_v39 = vld [vmem:[#allocation3 + $0x70] sm:$0xff]  ;;  %1498 = vmatpush.bf16.msrb.mxu0 %v3732_v38 }
  0xf1   : > { %v885_v62 = vmax.f32 %v739_v47, 0.0  ;;  %v886_v1 = vmax.f32 %v780_v48, 0.0  ;;  %1527 = vmatpush.bf16.msrb.mxu1 %v3740_v39 }
  0xf4   : > { %1499 = vmatpush.bf16.msrb.mxu0 %v3731_v46  ;;  %v3729_v46 = vld [vmem:[#allocation3 + $0x18] sm:$0xff] }
  0xf5   : > { %v820_v56 = vpop.f32.mrf.mxu2  ;;  %v861_v57 = vpop.f32.mrf.mxu3 }
  0xf6   : > { %v741_v58 = vpop.f32.mrf.mxu0  ;;  %v782_v61 = vpop.f32.mrf.mxu1  ;;  %v821_v47 = vadd.f32 %v820_v56, %v4527_v5  ;;  %v862_v48 = vadd.f32 %v861_v57, %v4529_v17 }
  0xf7   : > { %v742_v2 = vadd.f32 %v741_v58, %v4519_v40  ;;  %v783_v3 = vadd.f32 %v782_v61, %v4521_v45 }
  0xf8   : > { %v887_v18 = vmax.f32 %v821_v47, 0.0 }
  0xf9   : > { %v889_v29 = vmax.f32 %v742_v2, 0.0  ;;  %v890_v30 = vmax.f32 %v783_v3, 0.0 }
  0xfb   : > { %v917_v51 = vpack.c.bf16 %v889_v29, %v885_v62  ;;  %v918_v52 = vpack.c.bf16 %v890_v30, %v886_v1  ;;  %v888_v62 = vmax.f32 %v862_v48, 0.0  ;;  %v3754_v30 = vld [vmem:[#allocation3 + $0xe0] sm:$0xff] }
  0xfc   : > { %1587 = vmatpush.bf16.msrb.mxu3 %v3754_v30  ;;  %v3744_v30 = vld [vmem:[#allocation3 + $0x90] sm:$0xff] }
  0xfd   : > { %v823_v55 = vpop.f32.mrf.mxu2  ;;  %v864_v58 = vpop.f32.mrf.mxu3  ;;  %1197 = vmatmul.bf16.vlgmr.msra.gmra.mxu0 %v917_v51  ;;  %1226 = vmatmul.bf16.vlgmr.msra.gmra.mxu1 %v918_v52  ;;  %v3739_v51 = vld [vmem:[#allocation3 + $0x68] sm:$0xff]  ;;  %v3745_v52 = vld [vmem:[#allocation3 + $0x98] sm:$0xff] }
  0xfe   : > { %v824_v37 = vadd.f32 %v823_v55, %v4527_v5  ;;  %v865_v61 = vadd.f32 %v864_v58, %v4529_v17  ;;  %v744_v2 = vpop.f32.mrf.mxu0  ;;  %v785_v3 = vpop.f32.mrf.mxu1  ;;  %1528 = vmatpush.bf16.msrb.mxu1 %v3739_v51  ;;  %1559 = vmatpush.bf16.msrb.mxu2 %v3745_v52  ;;  %v3737_v51 = vld [vmem:[#allocation3 + $0x58] sm:$0xff] }
  0xff   : > { %v745_v57 = vadd.f32 %v744_v2, %v4519_v40  ;;  %v786_v39 = vadd.f32 %v785_v3, %v4521_v45  ;;  %v3753_v2 = vld [vmem:[#allocation3 + $0xd8] sm:$0xff] }
 0x100   : > { %v891_v1 = vmax.f32 %v824_v37, 0.0  ;;  %v892_v29 = vmax.f32 %v865_v61, 0.0  ;;  %1588 = vmatpush.bf16.msrb.mxu3 %v3753_v2 }
 0x101   : > { %v893_v48 = vmax.f32 %v745_v57, 0.0  ;;  %v894_v37 = vmax.f32 %v786_v39, 0.0 }
 0x102   : > { %v919_v38 = vpack.c.bf16 %v891_v1, %v887_v18  ;;  %v920_v56 = vpack.c.bf16 %v892_v29, %v888_v62  ;;  %v3730_v1 = vld [vmem:[#allocation3 + $0x20] sm:$0xff]  ;;  %1560 = vmatpush.bf16.msrb.mxu2 %v3744_v30 }
 0x103   : > { %v3738_v29 = vld [vmem:[#allocation3 + $0x60] sm:$0xff]  ;;  %1500 = vmatpush.bf16.msrb.mxu0 %v3730_v1 }
 0x104   : > { %1255 = vmatmul.bf16.vlgmr.msra.gmra.mxu2 %v919_v38  ;;  %1284 = vmatmul.bf16.vlgmr.msra.gmra.mxu3 %v920_v56 }
 0x105   : > { %v826_v55 = vpop.f32.mrf.mxu2  ;;  %v867_v58 = vpop.f32.mrf.mxu3  ;;  %1529 = vmatpush.bf16.msrb.mxu1 %v3738_v29 }
 0x106   : > { %v747_v15 = vpop.f32.mrf.mxu0  ;;  %v788_v47 = vpop.f32.mrf.mxu1  ;;  %v827_v38 = vadd.f32 %v826_v55, %v4527_v5  ;;  %v868_v57 = vadd.f32 %v867_v58, %v4529_v17  ;;  %v3752_v58 = vld [vmem:[#allocation3 + $0xd0] sm:$0xff] }
 0x107   : > { %v748_v61 = vadd.f32 %v747_v15, %v4519_v40  ;;  %v789_v18 = vadd.f32 %v788_v47, %v4521_v45  ;;  %1501 = vmatpush.bf16.msrb.mxu0 %v3729_v46  ;;  %1589 = vmatpush.bf16.msrb.mxu3 %v3752_v58  ;;  %v3735_v46 = vld [vmem:[#allocation3 + $0x48] sm:$0xff] }
 0x108   : > { %v895_v55 = vmax.f32 %v827_v38, 0.0  ;;  %v3743_v38 = vld [vmem:[#allocation3 + $0x88] sm:$0xff] }
 0x109   : > { %v897_v3 = vmax.f32 %v748_v61, 0.0  ;;  %v898_v62 = vmax.f32 %v789_v18, 0.0  ;;  %1530 = vmatpush.bf16.msrb.mxu1 %v3737_v51  ;;  %1561 = vmatpush.bf16.msrb.mxu2 %v3743_v38 }
 0x10b   : > { %v921_v56 = vpack.c.bf16 %v897_v3, %v893_v48  ;;  %v922_v14 = vpack.c.bf16 %v898_v62, %v894_v37  ;;  %v896_v48 = vmax.f32 %v868_v57, 0.0  ;;  %v3728_v3 = vld [vmem:[#allocation3 + $0x10] sm:$0xff] }
 0x10c   : > { %v3736_v62 = vld [vmem:[#allocation3 + $0x50] sm:$0xff]  ;;  %1502 = vmatpush.bf16.msrb.mxu0 %v3728_v3 }
 0x10d   : > { %v829_v15 = vpop.f32.mrf.mxu2  ;;  %v870_v39 = vpop.f32.mrf.mxu3  ;;  %1202 = vmatmul.bf16.gmra.mxu0 %v921_v56  ;;  %1231 = vmatmul.bf16.gmra.mxu1 %v922_v14  ;;  %v3751_v56 = vld [vmem:[#allocation3 + $0xc8] sm:$0xff] }
 0x10e   : > { %v830_v52 = vadd.f32 %v829_v15, %v4527_v5  ;;  %v871_v47 = vadd.f32 %v870_v39, %v4529_v17  ;;  %v750_v61 = vpop.f32.mrf.mxu0  ;;  %v791_v18 = vpop.f32.mrf.mxu1  ;;  %1531 = vmatpush.bf16.msrb.mxu1 %v3736_v62  ;;  %v3727_v15 = vld [vmem:[#allocation3 + $0x8] sm:$0xff]  ;;  %1590 = vmatpush.bf16.msrb.mxu3 %v3751_v56  ;;  %v3750_v56 = vld [vmem:[#allocation3 + $0xc0] sm:$0xff] }
 0x10f   : > { %v751_v14 = vadd.f32 %v750_v61, %v4519_v40  ;;  %v792_v30 = vadd.f32 %v791_v18, %v4521_v45 }
 0x110   : > { %v899_v37 = vmax.f32 %v830_v52, 0.0  ;;  %v900_v2 = vmax.f32 %v871_v47, 0.0  ;;  %v3742_v47 = vld [vmem:[#allocation3 + $0x80] sm:$0xff]  ;;  %1503 = vmatpush.bf16.msrb.mxu0 %v3727_v15 }
 0x111   : > { %1562 = vmatpush.bf16.msrb.mxu2 %v3742_v47 }
 0x112   : > { %v923_v1 = vpack.c.bf16 %v899_v37, %v895_v55  ;;  %v924_v29 = vpack.c.bf16 %v900_v2, %v896_v48  ;;  %v901_v55 = vmax.f32 %v751_v14, 0.0  ;;  %v902_v48 = vmax.f32 %v792_v30, 0.0  ;;  %1532 = vmatpush.bf16.msrb.mxu1 %v3735_v46  ;;  %v3726_v37 = vld [vmem:[#allocation3] sm:$0xff]  ;;  %1591 = vmatpush.bf16.msrb.mxu3 %v3750_v56 }
 0x113   : > { %v3734_v2 = vld [vmem:[#allocation3 + $0x40] sm:$0xff] }
 0x114   : > { %1260 = vmatmul.bf16.gmra.mxu2 %v923_v1  ;;  %1289 = vmatmul.bf16.gmra.mxu3 %v924_v29 }
 0x115   : > { %v832_v57 = vpop.f32.mrf.mxu2  ;;  %v873_v39 = vpop.f32.mrf.mxu3  ;;  %1504 = vmatpush.bf16.msrb.mxu0 %v3726_v37 }
 0x116   : > { %v753_v51 = vpop.f32.mrf.mxu0  ;;  %v794_v52 = vpop.f32.mrf.mxu1  ;;  %1533 = vmatpush.bf16.msrb.mxu1 %v3734_v2  ;;  %v833_v29 = vadd.f32 %v832_v57, %v4527_v5  ;;  %v874_v14 = vadd.f32 %v873_v39, %v4529_v17  ;;  %v1615_v2 = vld [vmem:[%s5142_s1 + $0x50] sm:$0xff] }
 0x117   : > { %v754_v61 = vadd.f32 %v753_v51, %v4519_v40  ;;  %v795_v18 = vadd.f32 %v794_v52, %v4521_v45  ;;  %1724 = vmatpush.msra.mxu2 %v1615_v2 }
 0x118   : > { %v903_v47 = vmax.f32 %v833_v29, 0.0 }
 0x119   : > { %v905_v58 = vmax.f32 %v754_v61, 0.0  ;;  %v906_v3 = vmax.f32 %v795_v18, 0.0 }
 0x11b   : > { %v925_v62 = vpack.c.bf16 %v905_v58, %v901_v55  ;;  %v926_v1 = vpack.c.bf16 %v906_v3, %v902_v48  ;;  %v904_v55 = vmax.f32 %v874_v14, 0.0  ;;  %v1616_v58 = vld [vmem:[%s5142_s1 + $0x58] sm:$0xff] }
 0x11c   : > { %1765 = vmatpush.msra.mxu3 %v1616_v58 }
 0x11d   : > { %v835_v30 = vpop.f32.mrf.mxu2  ;;  %v876_v38 = vpop.f32.mrf.mxu3  ;;  %1207 = vmatmul.bf16.gmra.mxu0 %v925_v62  ;;  %1236 = vmatmul.bf16.gmra.mxu1 %v926_v1 }
 0x11e   : > { %v836_v15 = vadd.f32 %v835_v30, %v4527_v5  ;;  %v877_v46 = vadd.f32 %v876_v38, %v4529_v17  ;;  %v756_v51 = vpop.f32.mrf.mxu0  ;;  %v797_v52 = vpop.f32.mrf.mxu1 }
 0x11f   : > { %v757_v39 = vadd.f32 %v756_v51, %v4519_v40  ;;  %v798_v37 = vadd.f32 %v797_v52, %v4521_v45 }
 0x120   : > { %v907_v48 = vmax.f32 %v836_v15, 0.0  ;;  %v908_v61 = vmax.f32 %v877_v46, 0.0 }
 0x121   : > { %v909_v14 = vmax.f32 %v757_v39, 0.0  ;;  %v910_v30 = vmax.f32 %v798_v37, 0.0 }
 0x122   : > { %v927_v18 = vpack.c.bf16 %v907_v48, %v903_v47  ;;  %v928_v57 = vpack.c.bf16 %v908_v61, %v904_v55 }
 0x124   : > { %1265 = vmatmul.bf16.gmra.mxu2 %v927_v18  ;;  %1294 = vmatmul.bf16.gmra.mxu3 %v928_v57  ;;  %v396_v18 = vld [vmem:[%s5120_s2] sm:$0xf] }
 0x125   : > { %v838_v3 = vpop.f32.mrf.mxu2  ;;  %v879_v62 = vpop.f32.mrf.mxu3  ;;  %v4568_v57 = vperm.slane %v396_v18, 0  ;;  %v4570_v39 = vperm.slane %v396_v18, 1 }
 0x126   : > { %v759_v1 = vpop.f32.mrf.mxu0  ;;  %v800_v29 = vpop.f32.mrf.mxu1  ;;  %v839_v47 = vadd.f32 %v838_v3, %v4527_v5  ;;  %v880_v55 = vadd.f32 %v879_v62, %v4529_v17 }
 0x127   : > { %v760_v38 = vadd.f32 %v759_v1, %v4519_v40  ;;  %v801_v56 = vadd.f32 %v800_v29, %v4521_v45  ;;  %v449_v29 = vadd.f32 %v4452_v19, %v4568_v57 }
 0x128   : > { %v911_v37 = vmax.f32 %v839_v47, 0.0  ;;  %v912_v2 = vmax.f32 %v880_v55, 0.0 }
 0x129   : > { %v913_v15 = vmax.f32 %v760_v38, 0.0  ;;  %v914_v46 = vmax.f32 %v801_v56, 0.0  ;;  %v1614_v38 = vld [vmem:[%s5142_s1 + $0x48] sm:$0xff]  ;;  %v595_v19 = vmax.f32 %v449_v29, 0.0 }
 0x12a   : > { %1683 = vmatpush.msra.mxu1 %v1614_v38 }
 0x12b   : > { %v929_v51 = vpack.c.bf16 %v913_v15, %v909_v14  ;;  %v930_v52 = vpack.c.bf16 %v914_v46, %v910_v30  ;;  %v490_v14 = vadd.f32 %v4454_v20, %v4570_v39  ;;  %v1613_v30 = vld [vmem:[%s5142_s1 + $0x40] sm:$0xff]  ;;  %v4588_v46 = vperm.slane %v396_v18, 3 }
 0x12c   : > { %1642 = vmatpush.msra.mxu0 %v1613_v30 }
 0x12d   : > { %v841_v48 = vpop.f32.mrf.mxu2  ;;  %v882_v61 = vpop.f32.mrf.mxu3  ;;  %1212 = vmatmul.bf16.gmra.mxu0 %v929_v51  ;;  %1241 = vmatmul.bf16.gmra.mxu1 %v930_v52  ;;  %v596_v20 = vmax.f32 %v490_v14, 0.0  ;;  %v575_v51 = vadd.f32 %v4466_v34, %v4588_v46  ;;  %v496_v34 = vadd.f32 %v4470_v36, %v4570_v39 }
 0x12e   : > { %v842_v40 = vadd.f32 %v841_v48, %v4527_v5  ;;  %v883_v45 = vadd.f32 %v882_v61, %v4529_v17  ;;  %v452_v5 = vadd.f32 %v4460_v27, %v4568_v57  ;;  %v493_v17 = vadd.f32 %v4462_v28, %v4570_v39 }
 0x12f   : > { %v4586_v27 = vperm.slane %v396_v18, 2  ;;  %v572_v48 = vadd.f32 %v4458_v26, %v4588_v46  ;;  %v499_v26 = vadd.f32 %v4478_v44, %v4570_v39  ;;  %v578_v44 = vadd.f32 %v4474_v42, %v4588_v46 }
 0x130   : > { %v915_v58 = vmax.f32 %v842_v40, 0.0  ;;  %v916_v3 = vmax.f32 %v883_v45, 0.0  ;;  %v599_v56 = vmax.f32 %v452_v5, 0.0  ;;  %v600_v15 = vmax.f32 %v493_v17, 0.0 }
 0x131   : > { %v534_v28 = vadd.f32 %v4464_v33, %v4586_v27  ;;  %v531_v55 = vadd.f32 %v4456_v25, %v4586_v27  ;;  %v602_v40 = vmax.f32 %v575_v51, 0.0  ;;  %v598_v45 = vmax.f32 %v572_v48, 0.0 }
 0x132   : > { %v931_v62 = vpack.c.bf16 %v915_v58, %v911_v37  ;;  %v932_v1 = vpack.c.bf16 %v916_v3, %v912_v2  ;;  %v627_v52 = vpack.c.bf16 %v599_v56, %v595_v19  ;;  %v628_v47 = vpack.c.bf16 %v600_v15, %v596_v20 }
 0x133   : > { %v601_v61 = vmax.f32 %v534_v28, 0.0  ;;  %v597_v18 = vmax.f32 %v531_v55, 0.0  ;;  %v630_v2 = vpack.c.bf16 %v602_v40, %v598_v45  ;;  %v455_v33 = vadd.f32 %v4468_v35, %v4568_v57 }
 0x134   : > { %1270 = vmatmul.bf16.gmra.mxu2 %v931_v62  ;;  %1299 = vmatmul.bf16.gmra.mxu3 %v932_v1  ;;  %v458_v25 = vadd.f32 %v4476_v43, %v4568_v57  ;;  %v604_v3 = vmax.f32 %v496_v34, 0.0  ;;  %v608_v1 = vmax.f32 %v499_v26, 0.0  ;;  %v540_v29 = vadd.f32 %v4480_v49, %v4586_v27 }
 0x135   : > { %v629_v37 = vpack.c.bf16 %v601_v61, %v597_v18  ;;  %v603_v58 = vmax.f32 %v455_v33, 0.0  ;;  %v581_v35 = vadd.f32 %v4482_v50, %v4588_v46  ;;  %v537_v43 = vadd.f32 %v4472_v41, %v4586_v27 }
 0x136   : > { %v607_v62 = vmax.f32 %v458_v25, 0.0  ;;  %v632_v36 = vpack.c.bf16 %v608_v1, %v604_v3  ;;  %v609_v5 = vmax.f32 %v540_v29, 0.0  ;;  %v606_v38 = vmax.f32 %v578_v44, 0.0 }
 0x137   : > { %v610_v17 = vmax.f32 %v581_v35, 0.0  ;;  %v605_v30 = vmax.f32 %v537_v43, 0.0  ;;  %v461_v49 = vadd.f32 %v4484_v53, %v4568_v57  ;;  %v502_v50 = vadd.f32 %v4486_v54, %v4570_v39 }
 0x138   : > { %v631_v14 = vpack.c.bf16 %v607_v62, %v603_v58  ;;  %v464_v41 = vadd.f32 %v4492_v63, %v4568_v57  ;;  %v505_v42 = vadd.f32 %v4494_v0, %v4570_v39  ;;  %v587_v53 = vadd.f32 %v4498_v7, %v4588_v46 }
 0x139   : > { %v633_v19 = vpack.c.bf16 %v609_v5, %v605_v30  ;;  %v634_v20 = vpack.c.bf16 %v610_v17, %v606_v38  ;;  %v611_v56 = vmax.f32 %v461_v49, 0.0  ;;  %v612_v15 = vmax.f32 %v502_v50, 0.0 }
 0x13a   : > { %v615_v28 = vmax.f32 %v464_v41, 0.0  ;;  %v616_v51 = vmax.f32 %v505_v42, 0.0  ;;  %v543_v63 = vadd.f32 %v4488_v59, %v4586_v27  ;;  %v584_v0 = vadd.f32 %v4490_v60, %v4588_v46 }
 0x13b   : > { %v618_v48 = vmax.f32 %v587_v53, 0.0  ;;  %v508_v7 = vadd.f32 %v4502_v16, %v4570_v39  ;;  %v470_v59 = vadd.f32 %v4508_v23, %v4568_v57  ;;  %v511_v60 = vadd.f32 %v4510_v24, %v4570_v39 }
 0x13c   : > { %v636_v54 = vpack.c.bf16 %v616_v51, %v612_v15  ;;  %v613_v61 = vmax.f32 %v543_v63, 0.0  ;;  %v614_v40 = vmax.f32 %v584_v0, 0.0  ;;  %v552_v25 = vadd.f32 %v4512_v31, %v4586_v27 }
 0x13d   : > { %1505 = vmatmul.bf16.vlgmr.msrb.gmra.mxu0 %v627_v52  ;;  %1534 = vmatmul.bf16.vlgmr.msrb.gmra.mxu1 %v628_v47  ;;  %v546_v52 = vadd.f32 %v4496_v6, %v4586_v27  ;;  %v635_v47 = vpack.c.bf16 %v615_v28, %v611_v56  ;;  %v467_v6 = vadd.f32 %v4500_v8, %v4568_v57  ;;  %v623_v33 = vmax.f32 %v470_v59, 0.0 }
 0x13e   : > { %v638_v45 = vpack.c.bf16 %v618_v48, %v614_v40  ;;  %v624_v34 = vmax.f32 %v511_v60, 0.0  ;;  %v593_v8 = vadd.f32 %v4514_v32, %v4588_v46  ;;  %v549_v23 = vadd.f32 %v4504_v21, %v4586_v27  ;;  %v3821_v60 = vld [vmem:[#allocation3 + $0x2f8] sm:$0xff] }
 0x13f   : > { %v617_v55 = vmax.f32 %v546_v52, 0.0  ;;  %v590_v24 = vadd.f32 %v4506_v22, %v4588_v46  ;;  %v625_v57 = vmax.f32 %v552_v25, 0.0 }
 0x140   : > { %v626_v39 = vmax.f32 %v593_v8, 0.0  ;;  %v621_v58 = vmax.f32 %v549_v23, 0.0  ;;  %v3820_v23 = vld [vmem:[#allocation3 + $0x2f0] sm:$0xff] }
 0x141   : > { %v637_v18 = vpack.c.bf16 %v617_v55, %v613_v61  ;;  %v622_v3 = vmax.f32 %v590_v24, 0.0  ;;  %v3813_v61 = vld [vmem:[#allocation3 + $0x2b8] sm:$0xff]  ;;  %v3811_v24 = vld [vmem:[#allocation3 + $0x2a8] sm:$0xff] }
 0x142   : > { %v641_v62 = vpack.c.bf16 %v625_v57, %v621_v58 }
 0x143   : > { %v642_v1 = vpack.c.bf16 %v626_v39, %v622_v3 }
 0x144   : > { %1563 = vmatmul.bf16.vlgmr.msrb.gmra.mxu2 %v629_v37  ;;  %1592 = vmatmul.bf16.vlgmr.msrb.gmra.mxu3 %v630_v2  ;;  %v619_v37 = vmax.f32 %v467_v6, 0.0  ;;  %v620_v2 = vmax.f32 %v508_v7, 0.0 }
 0x145   : > { %2153 = vmatpush.bf16.msrb.mxu2 %v3813_v61  ;;  %2182 = vmatpush.bf16.msrb.mxu3 %v3821_v60  ;;  %v3807_v60 = vld [vmem:[#allocation3 + $0x288] sm:$0xff] }
 0x146   : > { %v639_v26 = vpack.c.bf16 %v623_v33, %v619_v37  ;;  %v640_v16 = vpack.c.bf16 %v624_v34, %v620_v2  ;;  %v4747_v37 = vld [vmem:[%s4274_s24 + $0x38] sm:$0xff] }
 0x147   : > { %v3812_v2 = vld [vmem:[#allocation3 + $0x2b0] sm:$0xff] }
 0x149   : > { %2154 = vmatpush.bf16.msrb.mxu2 %v3812_v2  ;;  %2183 = vmatpush.bf16.msrb.mxu3 %v3820_v23  ;;  %v3799_v23 = vld [vmem:[#allocation3 + $0x248] sm:$0xff] }
 0x14d   : > { %1510 = vmatmul.bf16.gmra.mxu0 %v631_v14  ;;  %1539 = vmatmul.bf16.gmra.mxu1 %v632_v36 }
 0x14e   : > { %2155 = vmatpush.bf16.msrb.mxu2 %v3811_v24 }
 0x154   : > { %1568 = vmatmul.bf16.gmra.mxu2 %v633_v19  ;;  %1597 = vmatmul.bf16.gmra.mxu3 %v634_v20 }
 0x15d   : > { %1515 = vmatmul.bf16.gmra.mxu0 %v635_v47  ;;  %1544 = vmatmul.bf16.gmra.mxu1 %v636_v54 }
 0x164   : > { %1573 = vmatmul.bf16.gmra.mxu2 %v637_v18  ;;  %1602 = vmatmul.bf16.gmra.mxu3 %v638_v45 }
 0x16d   : > { %1520 = vmatmul.bf16.gmra.mxu0 %v639_v26  ;;  %1549 = vmatmul.bf16.gmra.mxu1 %v640_v16  ;;  %v3797_v26 = vld [vmem:[#allocation3 + $0x238] sm:$0xff] }
 0x16e   : > { %v3805_v16 = vld [vmem:[#allocation3 + $0x278] sm:$0xff]  ;;  %2095 = vmatpush.bf16.msrb.mxu0 %v3797_v26 }
 0x16f   : > { %2124 = vmatpush.bf16.msrb.mxu1 %v3805_v16  ;;  %v3791_v16 = vld [vmem:[#allocation3 + $0x208] sm:$0xff] }
 0x174   : > { %1578 = vmatmul.bf16.gmra.mxu2 %v641_v62  ;;  %1607 = vmatmul.bf16.gmra.mxu3 %v642_v1  ;;  %v3796_v62 = vld [vmem:[#allocation3 + $0x230] sm:$0xff] }
 0x175   : > { %v3804_v1 = vld [vmem:[#allocation3 + $0x270] sm:$0xff]  ;;  %2096 = vmatpush.bf16.msrb.mxu0 %v3796_v62 }
 0x176   : > { %2125 = vmatpush.bf16.msrb.mxu1 %v3804_v1  ;;  %v3815_v1 = vld [vmem:[#allocation3 + $0x2c8] sm:$0xff] }
 0x17a   : > { %v1198_v31 = vpop.f32.mrf.mxu0  ;;  %v1227_v32 = vpop.f32.mrf.mxu1 }
 0x17b   : > { %v1228_v29 = vadd.f32 %v1227_v32, %v1198_v31  ;;  %v3819_v31 = vld [vmem:[#allocation3 + $0x2e8] sm:$0xff]  ;;  %v3810_v32 = vld [vmem:[#allocation3 + $0x2a0] sm:$0xff] }
 0x17c   : > { %2184 = vmatpush.bf16.msrb.mxu3 %v3819_v31  ;;  %2156 = vmatpush.bf16.msrb.mxu2 %v3810_v32  ;;  %v3790_v31 = vld [vmem:[#allocation3 + $0x200] sm:$0xff] }
 0x17d   : > { %3400 = vmatmul.msk.f32.vlgmr.msra.gmra.mxu0 %vm406_vm0, %v4289_v4  ;;  %3408 = vmatmul.msk.f32.vlgmr.msra.gmra.mxu1 %vm406_vm0, %v4289_v4  ;;  %v3798_v32 = vld [vmem:[#allocation3 + $0x240] sm:$0xff] }
 0x182   : > { %v4650_v21 = vpop.f32.mrf.mxu0  ;;  %v4652_v22 = vpop.f32.mrf.mxu1 }
 0x184   : > { %3416 = vmatmul.msk.f32.vlgmr.msra.gmra.mxu2 %vm406_vm0, %v4289_v4  ;;  %3424 = vmatmul.msk.f32.vlgmr.msra.gmra.mxu3 %vm406_vm0, %v4289_v4 }
 0x185   : > { %3401 = vmatmul.msk.f32.gmra.mxu0 %vm406_vm0, %v4312_v9  ;;  %3409 = vmatmul.msk.f32.gmra.mxu1 %vm406_vm0, %v4312_v9 }
 0x187   : > { %v1256_v27 = vpop.f32.mrf.mxu2  ;;  %v1285_v46 = vpop.f32.mrf.mxu3 }
 0x188   : > { %v1257_v35 = vadd.f32 %v1256_v27, %v1228_v29 }
 0x18a   : > { %v4662_v14 = vadd.f32 %v1285_v46, %v1257_v35  ;;  %v1203_v36 = vpop.f32.mrf.mxu0  ;;  %v1232_v43 = vpop.f32.mrf.mxu1 }
 0x18b   : > { %v1233_v44 = vadd.f32 %v1232_v43, %v1203_v36  ;;  %v3795_v36 = vld [vmem:[#allocation3 + $0x228] sm:$0xff] }
 0x18c   : > { %3417 = vmatmul.msk.f32.gmra.mxu2 %vm406_vm0, %v4312_v9  ;;  %3425 = vmatmul.msk.f32.gmra.mxu3 %vm406_vm0, %v4312_v9  ;;  %v3803_v43 = vld [vmem:[#allocation3 + $0x268] sm:$0xff] }
 0x18d   : > { %3402 = vmatmul.msk.f32.gmra.mxu0 %vm406_vm0, %v4323_v10  ;;  %3410 = vmatmul.msk.f32.gmra.mxu1 %vm406_vm0, %v4323_v10 }
 0x18e   : > { %2097 = vmatpush.bf16.msrb.mxu0 %v3795_v36  ;;  %2126 = vmatpush.bf16.msrb.mxu1 %v3803_v43  ;;  %v3806_v36 = vld [vmem:[#allocation3 + $0x280] sm:$0xff] }
 0x18f   : > { %v4672_v4 = vpop.f32.mrf.mxu2  ;;  %v4674_v5 = vpop.f32.mrf.mxu3 }
 0x192   : > { %v4676_v17 = vpop.f32.mrf.mxu0  ;;  %v4678_v30 = vpop.f32.mrf.mxu1 }
 0x194   : > { %3418 = vmatmul.msk.f32.gmra.mxu2 %vm406_vm0, %v4323_v10  ;;  %3426 = vmatmul.msk.f32.gmra.mxu3 %vm406_vm0, %v4323_v10 }
 0x195   : > { %3403 = vmatmul.msk.f32.gmra.mxu0 %vm406_vm0, %v4334_v11  ;;  %3411 = vmatmul.msk.f32.gmra.mxu1 %vm406_vm0, %v4334_v11 }
 0x197   : > { %v1261_v9 = vpop.f32.mrf.mxu2  ;;  %v1290_v38 = vpop.f32.mrf.mxu3 }
 0x198   : > { %v1262_v19 = vadd.f32 %v1261_v9, %v1233_v44  ;;  %v3818_v44 = vld [vmem:[#allocation3 + $0x2e0] sm:$0xff]  ;;  %v3809_v9 = vld [vmem:[#allocation3 + $0x298] sm:$0xff] }
 0x199   : > { %2185 = vmatpush.bf16.msrb.mxu3 %v3818_v44  ;;  %2157 = vmatpush.bf16.msrb.mxu2 %v3809_v9  ;;  %v3814_v9 = vld [vmem:[#allocation3 + $0x2c0] sm:$0xff] }
 0x19a   : > { %v4688_v20 = vadd.f32 %v1290_v38, %v1262_v19  ;;  %v1208_v49 = vpop.f32.mrf.mxu0  ;;  %v1237_v50 = vpop.f32.mrf.mxu1 }
 0x19b   : > { %v1238_v41 = vadd.f32 %v1237_v50, %v1208_v49 }
 0x19c   : > { %3419 = vmatmul.msk.f32.gmra.mxu2 %vm406_vm0, %v4334_v11  ;;  %3427 = vmatmul.msk.f32.gmra.mxu3 %vm406_vm0, %v4334_v11 }
 0x19d   : > { %3404 = vmatmul.msk.f32.gmra.mxu0 %vm406_vm0, %v4345_v12  ;;  %3412 = vmatmul.msk.f32.gmra.mxu1 %vm406_vm0, %v4345_v12 }
 0x19f   : > { %v4698_v10 = vpop.f32.mrf.mxu2  ;;  %v4700_v42 = vpop.f32.mrf.mxu3 }
 0x1a2   : > { %v4702_v56 = vpop.f32.mrf.mxu0  ;;  %v4704_v15 = vpop.f32.mrf.mxu1 }
 0x1a4   : > { %3420 = vmatmul.msk.f32.gmra.mxu2 %vm406_vm0, %v4345_v12  ;;  %3428 = vmatmul.msk.f32.gmra.mxu3 %vm406_vm0, %v4345_v12  ;;  %v5145_v12 = vld [vmem:[#allocation16_spill] sm:$0xff] }
 0x1a5   : > { %3405 = vmatmul.msk.f32.gmra.mxu0 %vm406_vm0, %v4356_v13  ;;  %3413 = vmatmul.msk.f32.gmra.mxu1 %vm406_vm0, %v4356_v13 }
 0x1a7   : > { %v1266_v11 = vpop.f32.mrf.mxu2  ;;  %v1295_v28 = vpop.f32.mrf.mxu3 }
 0x1a8   : > { %v1267_v51 = vadd.f32 %v1266_v11, %v1238_v41  ;;  %v3794_v41 = vld [vmem:[#allocation3 + $0x220] sm:$0xff] }
 0x1a9   : > { %v3802_v11 = vld [vmem:[#allocation3 + $0x260] sm:$0xff]  ;;  %2098 = vmatpush.bf16.msrb.mxu0 %v3794_v41 }
 0x1aa   : > { %v4714_v52 = vadd.f32 %v1295_v28, %v1267_v51  ;;  %v1213_v53 = vpop.f32.mrf.mxu0  ;;  %v1242_v47 = vpop.f32.mrf.mxu1  ;;  %v3817_v28 = vld [vmem:[#allocation3 + $0x2d8] sm:$0xff]  ;;  %v3808_v51 = vld [vmem:[#allocation3 + $0x290] sm:$0xff]  ;;  %2127 = vmatpush.bf16.msrb.mxu1 %v3802_v11 }
 0x1ab   : > { %v1243_v54 = vadd.f32 %v1242_v47, %v1213_v53  ;;  %2186 = vmatpush.bf16.msrb.mxu3 %v3817_v28  ;;  %2158 = vmatpush.bf16.msrb.mxu2 %v3808_v51  ;;  %v2221_v28 = vld [vmem:[%s5142_s1 + $0x70] sm:$0xff] }
 0x1ac   : > { %3421 = vmatmul.msk.f32.gmra.mxu2 %vm406_vm0, %v4356_v13  ;;  %3429 = vmatmul.msk.f32.gmra.mxu3 %vm406_vm0, %v4356_v13  ;;  %v5150_v13 = vld [vmem:[#allocation17_spill] sm:$0xff] }
 0x1ad   : > { %3406 = vmatmul.msk.f32.gmra.mxu0 %vm406_vm0, %v5145_v12  ;;  %3414 = vmatmul.msk.f32.gmra.mxu1 %vm406_vm0, %v5145_v12 }
 0x1af   : > { %v4724_v63 = vpop.f32.mrf.mxu2  ;;  %v4726_v0 = vpop.f32.mrf.mxu3  ;;  %2159 = vmatpush.bf16.msrb.mxu2 %v3807_v60 }
 0x1b0   : > { %5146 = vst [vmem:[#allocation16_spill] sm:$0xff] %v4724_v63 }
 0x1b1   : > { %5147 = vst [vmem:[#allocation18_spill] sm:$0xff] %v4726_v0 }
 0x1b2   : > { %v4728_v55 = vpop.f32.mrf.mxu0  ;;  %v4730_v48 = vpop.f32.mrf.mxu1 }
 0x1b3   : > { %5148 = vst [vmem:[#allocation19_spill] sm:$0xff] %v4728_v55  ;;  %2160 = vmatpush.bf16.msrb.mxu2 %v3806_v36 }
 0x1b4   : > { %5149 = vst [vmem:[#allocation20_spill] sm:$0xff] %v4730_v48  ;;  %3422 = vmatmul.msk.f32.gmra.mxu2 %vm406_vm0, %v5145_v12  ;;  %3430 = vmatmul.msk.f32.gmra.mxu3 %vm406_vm0, %v5145_v12  ;;  %v3801_v12 = vld [vmem:[#allocation3 + $0x258] sm:$0xff] }
 0x1b5   : > { %3407 = vmatmul.msk.f32.gmra.mxu0 %vm406_vm0, %v5150_v13  ;;  %3415 = vmatmul.msk.f32.gmra.mxu1 %vm406_vm0, %v5150_v13 }
 0x1b6   : > { %2128 = vmatpush.bf16.msrb.mxu1 %v3801_v12  ;;  %v1617_v12 = vld [vmem:[%s5120_s2 + $0x8] sm:$0xf] }
 0x1b7   : > { %v1271_v40 = vpop.f32.mrf.mxu2  ;;  %v1300_v18 = vpop.f32.mrf.mxu3  ;;  %2330 = vmatpush.msra.mxu2 %v2221_v28  ;;  %v4822_v60 = vperm.slane %v1617_v12, 0  ;;  %v2219_v28 = vld [vmem:[%s5142_s1 + $0x60] sm:$0xff]  ;;  %v4840_v55 = vperm.slane %v1617_v12, 2 }
 0x1b8   : > { %v1272_v45 = vadd.f32 %v1271_v40, %v1243_v54  ;;  %v3793_v54 = vld [vmem:[#allocation3 + $0x218] sm:$0xff]  ;;  %v3816_v40 = vld [vmem:[#allocation3 + $0x2d0] sm:$0xff] }
 0x1b9   : > { %2099 = vmatpush.bf16.msrb.mxu0 %v3793_v54  ;;  %2187 = vmatpush.bf16.msrb.mxu3 %v3816_v40 }
 0x1ba   : > { %v4740_v6 = vadd.f32 %v1300_v18, %v1272_v45  ;;  %v4742_v7 = vpop.f32.mrf.mxu0  ;;  %v4744_v59 = vpop.f32.mrf.mxu1  ;;  %v3792_v18 = vld [vmem:[#allocation3 + $0x210] sm:$0xff] }
 0x1bb   : > { %v3800_v45 = vld [vmem:[#allocation3 + $0x250] sm:$0xff] }
 0x1bc   : > { %3423 = vmatmul.msk.f32.gmra.mxu2 %vm406_vm0, %v4747_v37  ;;  %3431 = vmatmul.msk.f32.gmra.mxu3 %vm406_vm0, %v4747_v37 }
 0x1bd   : > { %2100 = vmatpush.bf16.msrb.mxu0 %v3792_v18  ;;  %2129 = vmatpush.bf16.msrb.mxu1 %v3800_v45  ;;  %v2222_v45 = vld [vmem:[%s5142_s1 + $0x78] sm:$0xff] }
 0x1be   : > { %2188 = vmatpush.bf16.msrb.mxu3 %v3815_v1 }
 0x1bf   : > { %v4753_v33 = vpop.f32.mrf.mxu2  ;;  %v4755_v34 = vpop.f32.mrf.mxu3 }
 0x1c0   : > { %5151 = vst [vmem:[#allocation17_spill] sm:$0xff] %v4753_v33 }
 0x1c1   : > { %5152 = vst [vmem:[#allocation21_spill] sm:$0xff] %v4755_v34  ;;  %2101 = vmatpush.bf16.msrb.mxu0 %v3791_v16  ;;  %2130 = vmatpush.bf16.msrb.mxu1 %v3799_v23  ;;  %v4824_v16 = vperm.slane %v1617_v12, 1 }
 0x1c2   : > { %v4757_v25 = vpop.f32.mrf.mxu0  ;;  %v4759_v8 = vpop.f32.mrf.mxu1  ;;  %2189 = vmatpush.bf16.msrb.mxu3 %v3814_v9 }
 0x1c5   : > { %2102 = vmatpush.bf16.msrb.mxu0 %v3790_v31  ;;  %2131 = vmatpush.bf16.msrb.mxu1 %v3798_v32 }
 0x1c6   : > { %2371 = vmatpush.msra.mxu3 %v2222_v45 }
 0x1c7   : > { %v4761_v57 = vpop.f32.mrf.mxu2  ;;  %v4763_v39 = vpop.f32.mrf.mxu3 }
 0x1c9   : > { %2248 = vmatpush.msra.mxu0 %v2219_v28 }
 0x1ca   : > { %v4765_v58 = vpop.f32.mrf.mxu0  ;;  %v4767_v3 = vpop.f32.mrf.mxu1 }
 0x1cf   : > { %v4769_v29 = vpop.f32.mrf.mxu2  ;;  %v4771_v27 = vpop.f32.mrf.mxu3 }
 0x1d2   : > { %v4773_v46 = vpop.f32.mrf.mxu0  ;;  %v4775_v35 = vpop.f32.mrf.mxu1 }
 0x1d7   : > { %v4777_v38 = vpop.f32.mrf.mxu2  ;;  %v4779_v19 = vpop.f32.mrf.mxu3 }
 0x1da   : > { %v4781_v49 = vpop.f32.mrf.mxu0  ;;  %v4783_v50 = vpop.f32.mrf.mxu1 }
 0x1df   : > { %v4785_v53 = vpop.f32.mrf.mxu2  ;;  %v4787_v47 = vpop.f32.mrf.mxu3 }
 0x1e0   : > { %5153 = vst [vmem:[#allocation22_spill] sm:$0xff] %v4787_v47 }
 0x1e2   : > { %v4789_v13 = vpop.f32.mrf.mxu0  ;;  %v4791_v61 = vpop.f32.mrf.mxu1 }
 0x1e3   : > { %5154 = vst [vmem:[#allocation23_spill] sm:$0xff] %v4789_v13 }
 0x1e4   : > { %5155 = vst [vmem:[#allocation24_spill] sm:$0xff] %v4791_v61 }
 0x1e7   : > { %v4793_v2 = vpop.f32.mrf.mxu2  ;;  %v4795_v26 = vpop.f32.mrf.mxu3 }
 0x1ea   : > { %v4797_v24 = vpop.f32.mrf.mxu0  ;;  %v4799_v62 = vpop.f32.mrf.mxu1 }
 0x1ef   : > { %v4801_v43 = vpop.f32.mrf.mxu2  ;;  %v4803_v44 = vpop.f32.mrf.mxu3 }
 0x1f0   : > { %5156 = vst [vmem:[#allocation25_spill] sm:$0xff] %v4801_v43  ;;  %v4842_v43 = vperm.slane %v1617_v12, 3 }
 0x1f1   : > { %5157 = vst [vmem:[#allocation26_spill] sm:$0xff] %v4803_v44 }
 0x1f2   : > { %v4805_v41 = vpop.f32.mrf.mxu0  ;;  %v4807_v11 = vpop.f32.mrf.mxu1 }
 0x1f3   : > { %5158 = vst [vmem:[#allocation27_spill] sm:$0xff] %v4805_v41 }
 0x1f4   : > { %5159 = vst [vmem:[#allocation28_spill] sm:$0xff] %v4807_v11  ;;  %v2220_v11 = vld [vmem:[%s5142_s1 + $0x68] sm:$0xff] }
 0x1f5   : > { %2289 = vmatpush.msra.mxu1 %v2220_v11 }
 0x1f7   : > { %v4812_v51 = vpop.f32.mrf.mxu2  ;;  %v4814_v54 = vpop.f32.mrf.mxu3 }
 0x1fa   : > { %v1644_v40 = vpop.f32.mrf.mxu0  ;;  %v1685_v18 = vpop.f32.mrf.mxu1 }
 0x1fb   : > { %v1645_v31 = vadd.f32 %v1644_v40, %v4822_v60  ;;  %v1686_v32 = vadd.f32 %v1685_v18, %v4824_v16 }
 0x1fd   : > { %v1791_v41 = vmax.f32 %v1645_v31, 0.0  ;;  %v1792_v45 = vmax.f32 %v1686_v32, 0.0 }
 0x1ff   : > { %v4826_v23 = vpop.f32.mrf.mxu2  ;;  %v4828_v1 = vpop.f32.mrf.mxu3 }
 0x200   : > { %5160 = vst [vmem:[#allocation29_spill] sm:$0xff] %v4826_v23 }
 0x201   : > { %5161 = vst [vmem:[#allocation30_spill] sm:$0xff] %v4828_v1 }
 0x202   : > { %v1647_v36 = vpop.f32.mrf.mxu0  ;;  %v1688_v9 = vpop.f32.mrf.mxu1 }
 0x203   : > { %v1648_v23 = vadd.f32 %v1647_v36, %v4822_v60  ;;  %v1689_v1 = vadd.f32 %v1688_v9, %v4824_v16 }
 0x205   : > { %v1795_v40 = vmax.f32 %v1648_v23, 0.0  ;;  %v1796_v18 = vmax.f32 %v1689_v1, 0.0 }
 0x207   : > { %v1726_v34 = vpop.f32.mrf.mxu2  ;;  %v1767_v44 = vpop.f32.mrf.mxu3  ;;  %v1823_v33 = vpack.c.bf16 %v1795_v40, %v1791_v41  ;;  %v1824_v48 = vpack.c.bf16 %v1796_v18, %v1792_v45 }
 0x208   : > { %v1727_v36 = vadd.f32 %v1726_v34, %v4840_v55  ;;  %v1768_v9 = vadd.f32 %v1767_v44, %v4842_v43 }
 0x209   : > { %2103 = vmatmul.bf16.vlgmr.msrb.gmra.mxu0 %v1823_v33  ;;  %2132 = vmatmul.bf16.vlgmr.msrb.gmra.mxu1 %v1824_v48 }
 0x20a   : > { %v1650_v31 = vpop.f32.mrf.mxu0  ;;  %v1691_v32 = vpop.f32.mrf.mxu1  ;;  %v1793_v33 = vmax.f32 %v1727_v36, 0.0  ;;  %v1794_v45 = vmax.f32 %v1768_v9, 0.0 }
 0x20b   : > { %v1651_v23 = vadd.f32 %v1650_v31, %v4822_v60  ;;  %v1692_v1 = vadd.f32 %v1691_v32, %v4824_v16 }
 0x20d   : > { %v1799_v13 = vmax.f32 %v1651_v23, 0.0  ;;  %v1800_v34 = vmax.f32 %v1692_v1, 0.0 }
 0x20f   : > { %v1729_v28 = vpop.f32.mrf.mxu2  ;;  %v1770_v11 = vpop.f32.mrf.mxu3 }
 0x210   : > { %v1730_v41 = vadd.f32 %v1729_v28, %v4840_v55  ;;  %v1771_v48 = vadd.f32 %v1770_v11, %v4842_v43 }
 0x212   : > { %v1797_v12 = vmax.f32 %v1730_v41, 0.0  ;;  %v1798_v40 = vmax.f32 %v1771_v48, 0.0  ;;  %v1653_v18 = vpop.f32.mrf.mxu0  ;;  %v1694_v61 = vpop.f32.mrf.mxu1 }
 0x213   : > { %v1654_v44 = vadd.f32 %v1653_v18, %v4822_v60  ;;  %v1695_v0 = vadd.f32 %v1694_v61, %v4824_v16 }
 0x214   : > { %v1825_v47 = vpack.c.bf16 %v1797_v12, %v1793_v33  ;;  %v1826_v31 = vpack.c.bf16 %v1798_v40, %v1794_v45 }
 0x215   : > { %v1803_v63 = vmax.f32 %v1654_v44, 0.0  ;;  %v1804_v32 = vmax.f32 %v1695_v0, 0.0 }
 0x216   : > { %2161 = vmatmul.bf16.vlgmr.msrb.gmra.mxu2 %v1825_v47  ;;  %2190 = vmatmul.bf16.vlgmr.msrb.gmra.mxu3 %v1826_v31 }
 0x217   : > { %v1732_v28 = vpop.f32.mrf.mxu2  ;;  %v1773_v11 = vpop.f32.mrf.mxu3  ;;  %v1827_v36 = vpack.c.bf16 %v1803_v63, %v1799_v13  ;;  %v1828_v9 = vpack.c.bf16 %v1804_v32, %v1800_v34 }
 0x218   : > { %v1733_v23 = vadd.f32 %v1732_v28, %v4840_v55  ;;  %v1774_v1 = vadd.f32 %v1773_v11, %v4842_v43 }
 0x219   : > { %2108 = vmatmul.bf16.gmra.mxu0 %v1827_v36  ;;  %2137 = vmatmul.bf16.gmra.mxu1 %v1828_v9 }
 0x21a   : > { %v1656_v41 = vpop.f32.mrf.mxu0  ;;  %v1697_v48 = vpop.f32.mrf.mxu1  ;;  %v1801_v63 = vmax.f32 %v1733_v23, 0.0  ;;  %v1802_v13 = vmax.f32 %v1774_v1, 0.0 }
 0x21b   : > { %v1657_v33 = vadd.f32 %v1656_v41, %v4822_v60  ;;  %v1698_v0 = vadd.f32 %v1697_v48, %v4824_v16 }
 0x21d   : > { %v1807_v31 = vmax.f32 %v1657_v33, 0.0  ;;  %v1808_v32 = vmax.f32 %v1698_v0, 0.0 }
 0x21f   : > { %v1735_v18 = vpop.f32.mrf.mxu2  ;;  %v1776_v61 = vpop.f32.mrf.mxu3 }
 0x220   : > { %v1736_v47 = vadd.f32 %v1735_v18, %v4840_v55  ;;  %v1777_v45 = vadd.f32 %v1776_v61, %v4842_v43 }
 0x222   : > { %v1805_v12 = vmax.f32 %v1736_v47, 0.0  ;;  %v1806_v40 = vmax.f32 %v1777_v45, 0.0  ;;  %v1659_v34 = vpop.f32.mrf.mxu0  ;;  %v1700_v44 = vpop.f32.mrf.mxu1 }
 0x223   : > { %v1660_v28 = vadd.f32 %v1659_v34, %v4822_v60  ;;  %v1701_v11 = vadd.f32 %v1700_v44, %v4824_v16 }
 0x224   : > { %v1829_v36 = vpack.c.bf16 %v1805_v12, %v1801_v63  ;;  %v1830_v9 = vpack.c.bf16 %v1806_v40, %v1802_v13 }
 0x225   : > { %v1811_v41 = vmax.f32 %v1660_v28, 0.0  ;;  %v1812_v48 = vmax.f32 %v1701_v11, 0.0 }
 0x226   : > { %2166 = vmatmul.bf16.gmra.mxu2 %v1829_v36  ;;  %2195 = vmatmul.bf16.gmra.mxu3 %v1830_v9 }
 0x227   : > { %v1738_v18 = vpop.f32.mrf.mxu2  ;;  %v1779_v61 = vpop.f32.mrf.mxu3  ;;  %v1831_v23 = vpack.c.bf16 %v1811_v41, %v1807_v31  ;;  %v1832_v1 = vpack.c.bf16 %v1812_v48, %v1808_v32 }
 0x228   : > { %v1739_v33 = vadd.f32 %v1738_v18, %v4840_v55  ;;  %v1780_v0 = vadd.f32 %v1779_v61, %v4842_v43 }
 0x229   : > { %2113 = vmatmul.bf16.gmra.mxu0 %v1831_v23  ;;  %2142 = vmatmul.bf16.gmra.mxu1 %v1832_v1 }
 0x22a   : > { %v1662_v47 = vpop.f32.mrf.mxu0  ;;  %v1703_v45 = vpop.f32.mrf.mxu1  ;;  %v1809_v31 = vmax.f32 %v1739_v33, 0.0  ;;  %v1810_v32 = vmax.f32 %v1780_v0, 0.0 }
 0x22b   : > { %v1663_v63 = vadd.f32 %v1662_v47, %v4822_v60  ;;  %v1704_v13 = vadd.f32 %v1703_v45, %v4824_v16 }
 0x22d   : > { %v1815_v41 = vmax.f32 %v1663_v63, 0.0  ;;  %v1816_v48 = vmax.f32 %v1704_v13, 0.0 }
 0x22f   : > { %v1741_v34 = vpop.f32.mrf.mxu2  ;;  %v1782_v44 = vpop.f32.mrf.mxu3 }
 0x230   : > { %v1742_v12 = vadd.f32 %v1741_v34, %v4840_v55  ;;  %v1783_v40 = vadd.f32 %v1782_v44, %v4842_v43 }
 0x232   : > { %v1813_v28 = vmax.f32 %v1742_v12, 0.0  ;;  %v1814_v11 = vmax.f32 %v1783_v40, 0.0  ;;  %v1665_v36 = vpop.f32.mrf.mxu0  ;;  %v1706_v9 = vpop.f32.mrf.mxu1 }
 0x233   : > { %v1666_v18 = vadd.f32 %v1665_v36, %v4822_v60  ;;  %v1707_v61 = vadd.f32 %v1706_v9, %v4824_v16 }
 0x234   : > { %v1833_v23 = vpack.c.bf16 %v1813_v28, %v1809_v31  ;;  %v1834_v1 = vpack.c.bf16 %v1814_v11, %v1810_v32 }
 0x235   : > { %v1819_v47 = vmax.f32 %v1666_v18, 0.0  ;;  %v1820_v45 = vmax.f32 %v1707_v61, 0.0  ;;  %v3949_v18 = vld [vmem:[%s4274_s24 + $0x20] sm:$0xff]  ;;  %v3950_v61 = vld [vmem:[%s4274_s24 + $0x28] sm:$0xff] }
 0x236   : > { %2171 = vmatmul.bf16.gmra.mxu2 %v1833_v23  ;;  %2200 = vmatmul.bf16.gmra.mxu3 %v1834_v1  ;;  %v3951_v23 = vld [vmem:[%s4274_s24 + $0x30] sm:$0xff] }
 0x237   : > { %v1744_v34 = vpop.f32.mrf.mxu2  ;;  %v1785_v44 = vpop.f32.mrf.mxu3  ;;  %v1835_v33 = vpack.c.bf16 %v1819_v47, %v1815_v41  ;;  %v1836_v0 = vpack.c.bf16 %v1820_v45, %v1816_v48  ;;  %v3945_v41 = vld [vmem:[%s4274_s24] sm:$0xff]  ;;  %v3946_v48 = vld [vmem:[%s4274_s24 + $0x8] sm:$0xff] }
 0x238   : > { %v1745_v63 = vadd.f32 %v1744_v34, %v4840_v55  ;;  %v1786_v13 = vadd.f32 %v1785_v44, %v4842_v43  ;;  %v3845_v45 = vld [vmem:[#allocation3 + $0x3b8] sm:$0xff] }
 0x239   : > { %2118 = vmatmul.bf16.gmra.mxu0 %v1835_v33  ;;  %2147 = vmatmul.bf16.gmra.mxu1 %v1836_v0  ;;  %v3853_v33 = vld [vmem:[#allocation3 + $0x3f8] sm:$0xff] }
 0x23a   : > { %v1817_v31 = vmax.f32 %v1745_v63, 0.0  ;;  %v1818_v32 = vmax.f32 %v1786_v13, 0.0  ;;  %2759 = vmatpush.bf16.msrb.mxu2 %v3845_v45  ;;  %v3829_v0 = vld [vmem:[#allocation3 + $0x338] sm:$0xff]  ;;  %2788 = vmatpush.bf16.msrb.mxu3 %v3853_v33  ;;  %v3827_v45 = vld [vmem:[#allocation3 + $0x328] sm:$0xff]  ;;  %v1512_v33 = vadd.f32 %v4765_v58, %v4688_v20 }
 0x23b   : > { %v3837_v63 = vld [vmem:[#allocation3 + $0x378] sm:$0xff]  ;;  %2701 = vmatpush.bf16.msrb.mxu0 %v3829_v0 }
 0x23c   : > { %2730 = vmatpush.bf16.msrb.mxu1 %v3837_v63  ;;  %v1541_v63 = vadd.f32 %v4767_v3, %v1512_v33  ;;  %v3825_v58 = vld [vmem:[#allocation3 + $0x318] sm:$0xff] }
 0x23f   : > { %v1747_v60 = vpop.f32.mrf.mxu2  ;;  %v1788_v16 = vpop.f32.mrf.mxu3 }
 0x240   : > { %v1748_v12 = vadd.f32 %v1747_v60, %v4840_v55  ;;  %v1789_v40 = vadd.f32 %v1788_v16, %v4842_v43  ;;  %v3947_v55 = vld [vmem:[%s4274_s24 + $0x10] sm:$0xff]  ;;  %v3948_v43 = vld [vmem:[%s4274_s24 + $0x18] sm:$0xff]  ;;  %v1507_v16 = vadd.f32 %v4742_v7, %v4662_v14  ;;  %s4026_s24 = sshra.s32 %s2926_s3, 4  ;;  %s4027_s24 = int_to_ptr.hbm [resolvable:$true] %s4026_s24 }
 0x241   : > { %v3844_v60 = vld [vmem:[#allocation3 + $0x3b0] sm:$0xff]  ;;  %s4028_s19 = scalar_lea.hbm %s4027_s24, 64  ;;  %p4033_p5 = scmp.lt.s32.totalorder %s4027_s24, %s5125_s7 }
 0x242   : > { %v1821_v28 = vmax.f32 %v1748_v12, 0.0  ;;  %v1822_v11 = vmax.f32 %v1789_v40, 0.0  ;;  %2760 = vmatpush.bf16.msrb.mxu2 %v3844_v60  ;;  %v1536_v12 = vadd.f32 %v4744_v59, %v1507_v16  ;;  %p4029_p1 = scmp.ne.s32.totalorder %s4027_s24, %s4028_s19  ;;  %p4034_p6 = scmp.lt.s32.totalorder %s4032_s11, %s4028_s19 }
 0x244   : > { %v1837_v36 = vpack.c.bf16 %v1821_v28, %v1817_v31  ;;  %v1838_v9 = vpack.c.bf16 %v1822_v11, %v1818_v32  ;;  %v3852_v32 = vld [vmem:[#allocation3 + $0x3f0] sm:$0xff]  ;;  %p4030_p2 = pnand %p4029_p1, %p4226_p4  ;;  %p4035_p7 = por %p4034_p6, %p4033_p5 }
 0x245   : > { %v3836_v28 = vld [vmem:[#allocation3 + $0x370] sm:$0xff]  ;;  %2789 = vmatpush.bf16.msrb.mxu3 %v3852_v32 }
 0x246   : > { %2176 = vmatmul.bf16.gmra.mxu2 %v1837_v36  ;;  %2205 = vmatmul.bf16.gmra.mxu3 %v1838_v9  ;;  %v3843_v36 = vld [vmem:[#allocation3 + $0x3a8] sm:$0xff]  ;;  %v1565_v9 = vadd.f32 %v4761_v57, %v1536_v12  ;;  %v3842_v57 = vld [vmem:[#allocation3 + $0x3a0] sm:$0xff]  ;;  %p4031_p3 = pneg %p4030_p2 }
 0x247   : > { %2731 = vmatpush.bf16.msrb.mxu1 %v3836_v28  ;;  %2761 = vmatpush.bf16.msrb.mxu2 %v3843_v36  ;;  %v3850_v12 = vld [vmem:[#allocation3 + $0x3e0] sm:$0xff]  ;;  %v1570_v28 = vadd.f32 %v4777_v38, %v1541_v63  ;;  %v3840_v38 = vld [vmem:[#allocation3 + $0x390] sm:$0xff] }
 0x248   : > { %v1594_v14 = vadd.f32 %v4763_v39, %v1565_v9  ;;  %v3848_v63 = vld [vmem:[#allocation3 + $0x3d0] sm:$0xff]  ;;  %p4036_p9 = pnand %p4035_p7, %p4031_p3 }
 0x249   : > { %3560 = vmatmul.msk.f32.vlgmr.msra.gmra.mxu0 %vm406_vm0, %v3945_v41  ;;  %3568 = vmatmul.msk.f32.vlgmr.msra.gmra.mxu1 %vm406_vm0, %v3945_v41  ;;  %v1599_v3 = vadd.f32 %v4779_v19, %v1570_v28  ;;  %v1517_v19 = vadd.f32 %v4781_v49, %v4714_v52 }
 0x24b   : > { %2762 = vmatpush.bf16.msrb.mxu2 %v3842_v57  ;;  %v3831_v57 = vld [vmem:[#allocation3 + $0x348] sm:$0xff] }
 0x251   : > { %3561 = vmatmul.msk.f32.gmra.mxu0 %vm406_vm0, %v3946_v48  ;;  %3569 = vmatmul.msk.f32.gmra.mxu1 %vm406_vm0, %v3946_v48 }
 0x256   : > { %3576 = vmatmul.msk.f32.vlgmr.msra.gmra.mxu2 %vm406_vm0, %v3945_v41  ;;  %3584 = vmatmul.msk.f32.vlgmr.msra.gmra.mxu3 %vm406_vm0, %v3945_v41 }
 0x259   : > { %3562 = vmatmul.msk.f32.gmra.mxu0 %vm406_vm0, %v3947_v55  ;;  %3570 = vmatmul.msk.f32.gmra.mxu1 %vm406_vm0, %v3947_v55 }
 0x25e   : > { %3577 = vmatmul.msk.f32.gmra.mxu2 %vm406_vm0, %v3946_v48  ;;  %3585 = vmatmul.msk.f32.gmra.mxu3 %vm406_vm0, %v3946_v48 }
 0x261   : > { %3563 = vmatmul.msk.f32.gmra.mxu0 %vm406_vm0, %v3948_v43  ;;  %3571 = vmatmul.msk.f32.gmra.mxu1 %vm406_vm0, %v3948_v43 }
 0x266   : > { %3578 = vmatmul.msk.f32.gmra.mxu2 %vm406_vm0, %v3947_v55  ;;  %3586 = vmatmul.msk.f32.gmra.mxu3 %vm406_vm0, %v3947_v55 }
 0x269   : > { %3564 = vmatmul.msk.f32.gmra.mxu0 %vm406_vm0, %v3949_v18  ;;  %3572 = vmatmul.msk.f32.gmra.mxu1 %vm406_vm0, %v3949_v18 }
 0x26e   : > { %3579 = vmatmul.msk.f32.gmra.mxu2 %vm406_vm0, %v3948_v43  ;;  %3587 = vmatmul.msk.f32.gmra.mxu3 %vm406_vm0, %v3948_v43 }
 0x271   : > { %3565 = vmatmul.msk.f32.gmra.mxu0 %vm406_vm0, %v3950_v61  ;;  %3573 = vmatmul.msk.f32.gmra.mxu1 %vm406_vm0, %v3950_v61 }
 0x276   : > { %3580 = vmatmul.msk.f32.gmra.mxu2 %vm406_vm0, %v3949_v18  ;;  %3588 = vmatmul.msk.f32.gmra.mxu3 %vm406_vm0, %v3949_v18 }
 0x279   : > { %3566 = vmatmul.msk.f32.gmra.mxu0 %vm406_vm0, %v3951_v23  ;;  %3574 = vmatmul.msk.f32.gmra.mxu1 %vm406_vm0, %v3951_v23 }
 0x27e   : > { %3581 = vmatmul.msk.f32.gmra.mxu2 %vm406_vm0, %v3950_v61  ;;  %3589 = vmatmul.msk.f32.gmra.mxu3 %vm406_vm0, %v3950_v61 }
 0x281   : > { %3567 = vmatmul.msk.f32.gmra.mxu0 %vm406_vm0, %v4747_v37  ;;  %3575 = vmatmul.msk.f32.gmra.mxu1 %vm406_vm0, %v4747_v37 }
 0x286   : > { %3582 = vmatmul.msk.f32.gmra.mxu2 %vm406_vm0, %v3951_v23  ;;  %3590 = vmatmul.msk.f32.gmra.mxu3 %vm406_vm0, %v3951_v23  ;;  %v2104_v1 = vpop.f32.mrf.mxu0  ;;  %v2133_v47 = vpop.f32.mrf.mxu1  ;;  %v3851_v23 = vld [vmem:[#allocation3 + $0x3e8] sm:$0xff] }
 0x287   : > { %v2134_v41 = vadd.f32 %v2133_v47, %v2104_v1  ;;  %2790 = vmatpush.bf16.msrb.mxu3 %v3851_v23 }
 0x28b   : > { %2791 = vmatpush.bf16.msrb.mxu3 %v3850_v12  ;;  %v3822_v12 = vld [vmem:[#allocation3 + $0x300] sm:$0xff] }
 0x28e   : > { %3583 = vmatmul.msk.f32.gmra.mxu2 %vm406_vm0, %v4747_v37  ;;  %3591 = vmatmul.msk.f32.gmra.mxu3 %vm406_vm0, %v4747_v37  ;;  %v2106_v34 = vpop.f32.mrf.mxu0  ;;  %v2135_v44 = vpop.f32.mrf.mxu1  ;;  %v3828_v37 = vld [vmem:[#allocation3 + $0x330] sm:$0xff] }
 0x28f   : > { %v2136_v13 = vadd.f32 %v2135_v44, %v2106_v34  ;;  %2702 = vmatpush.bf16.msrb.mxu0 %v3828_v37  ;;  %v3835_v34 = vld [vmem:[#allocation3 + $0x368] sm:$0xff]  ;;  %v3841_v37 = vld [vmem:[#allocation3 + $0x398] sm:$0xff] }
 0x290   : > { %2732 = vmatpush.bf16.msrb.mxu1 %v3835_v34  ;;  %2763 = vmatpush.bf16.msrb.mxu2 %v3841_v37  ;;  %v3823_v34 = vld [vmem:[#allocation3 + $0x308] sm:$0xff] }
 0x293   : > { %2703 = vmatpush.bf16.msrb.mxu0 %v3827_v45 }
 0x294   : > { %2764 = vmatpush.bf16.msrb.mxu2 %v3840_v38 }
 0x296   : > { %v2109_v40 = vpop.f32.mrf.mxu0  ;;  %v2138_v31 = vpop.f32.mrf.mxu1 }
 0x297   : > { %v2139_v11 = vadd.f32 %v2138_v31, %v2109_v40  ;;  %v3826_v40 = vld [vmem:[#allocation3 + $0x320] sm:$0xff] }
 0x298   : > { %v3834_v31 = vld [vmem:[#allocation3 + $0x360] sm:$0xff]  ;;  %2704 = vmatpush.bf16.msrb.mxu0 %v3826_v40 }
 0x299   : > { %v2162_v48 = vpop.f32.mrf.mxu2  ;;  %v2191_v55 = vpop.f32.mrf.mxu3  ;;  %2733 = vmatpush.bf16.msrb.mxu1 %v3834_v31  ;;  %v3830_v40 = vld [vmem:[#allocation3 + $0x340] sm:$0xff] }
 0x29a   : > { %v2163_v43 = vadd.f32 %v2162_v48, %v2134_v41 }
 0x29c   : > { %v2192_v7 = vadd.f32 %v2191_v55, %v2163_v43  ;;  %2705 = vmatpush.bf16.msrb.mxu0 %v3825_v58 }
 0x29e   : > { %v4920_v59 = vadd.f32 %v2192_v7, %v1594_v14  ;;  %v2111_v18 = vpop.f32.mrf.mxu0  ;;  %v2140_v61 = vpop.f32.mrf.mxu1  ;;  %v3849_v14 = vld [vmem:[#allocation3 + $0x3d8] sm:$0xff] }
 0x29f   : > { %v2141_v44 = vadd.f32 %v2140_v61, %v2111_v18  ;;  %v3824_v18 = vld [vmem:[#allocation3 + $0x310] sm:$0xff]  ;;  %2792 = vmatpush.bf16.msrb.mxu3 %v3849_v14 }
 0x2a0   : > { %v3832_v61 = vld [vmem:[#allocation3 + $0x350] sm:$0xff]  ;;  %2706 = vmatpush.bf16.msrb.mxu0 %v3824_v18 }
 0x2a1   : > { %v2164_v1 = vpop.f32.mrf.mxu2  ;;  %v2193_v47 = vpop.f32.mrf.mxu3 }
 0x2a2   : > { %v2165_v39 = vadd.f32 %v2164_v1, %v2136_v13  ;;  %v3833_v13 = vld [vmem:[#allocation3 + $0x358] sm:$0xff] }
 0x2a3   : > { %2734 = vmatpush.bf16.msrb.mxu1 %v3833_v13  ;;  %2793 = vmatpush.bf16.msrb.mxu3 %v3848_v63 }
 0x2a4   : > { %v4924_v0 = vadd.f32 %v2193_v47, %v2165_v39  ;;  %2707 = vmatpush.bf16.msrb.mxu0 %v3823_v34  ;;  %v1546_v47 = vadd.f32 %v4783_v50, %v1517_v19  ;;  %v3847_v50 = vld [vmem:[#allocation3 + $0x3c8] sm:$0xff] }
 0x2a6   : > { %v2114_v60 = vpop.f32.mrf.mxu0  ;;  %v2143_v16 = vpop.f32.mrf.mxu1  ;;  %v1575_v31 = vadd.f32 %v4793_v2, %v1546_v47 }
 0x2a7   : > { %v2144_v32 = vadd.f32 %v2143_v16, %v2114_v60  ;;  %2735 = vmatpush.bf16.msrb.mxu1 %v3832_v61  ;;  %v3839_v60 = vld [vmem:[#allocation3 + $0x388] sm:$0xff]  ;;  %2794 = vmatpush.bf16.msrb.mxu3 %v3847_v50 }
 0x2a8   : > { %2765 = vmatpush.bf16.msrb.mxu2 %v3839_v60  ;;  %2708 = vmatpush.bf16.msrb.mxu0 %v3822_v12  ;;  %v1604_v37 = vadd.f32 %v4795_v26, %v1575_v31  ;;  %v2223_v26 = vld [vmem:[%s5120_s2 + $0xc] sm:$0xf] }
 0x2a9   : > { %v2167_v36 = vpop.f32.mrf.mxu2  ;;  %v2196_v9 = vpop.f32.mrf.mxu3  ;;  %v4948_v61 = vperm.slane %v2223_v26, 0 }
 0x2aa   : > { %v2168_v20 = vadd.f32 %v2167_v36, %v2139_v11  ;;  %v3838_v36 = vld [vmem:[#allocation3 + $0x380] sm:$0xff] }
 0x2ab   : > { %2736 = vmatpush.bf16.msrb.mxu1 %v3831_v57 }
 0x2ac   : > { %v2197_v41 = vadd.f32 %v2196_v9, %v2168_v20  ;;  %2766 = vmatpush.bf16.msrb.mxu2 %v3838_v36 }
 0x2ae   : > { %v4929_v48 = vadd.f32 %v2197_v41, %v1599_v3  ;;  %v2116_v55 = vpop.f32.mrf.mxu0  ;;  %v2145_v43 = vpop.f32.mrf.mxu1  ;;  %v1522_v41 = vadd.f32 %v4797_v24, %v4740_v6 }
 0x2af   : > { %v2146_v7 = vadd.f32 %v2145_v43, %v2116_v55  ;;  %2737 = vmatpush.bf16.msrb.mxu1 %v3830_v40  ;;  %v3846_v43 = vld [vmem:[#allocation3 + $0x3c0] sm:$0xff] }
 0x2b0   : > { %2795 = vmatpush.bf16.msrb.mxu3 %v3846_v43  ;;  %v1551_v14 = vadd.f32 %v4799_v62, %v1522_v41 }
 0x2b1   : > { %v2169_v23 = vpop.f32.mrf.mxu2  ;;  %v2198_v11 = vpop.f32.mrf.mxu3 }
 0x2b2   : > { %v2170_v45 = vadd.f32 %v2169_v23, %v2141_v44  ;;  %v4950_v23 = vperm.slane %v2223_v26, 1 }
 0x2b4   : > { %v4933_v1 = vadd.f32 %v2198_v11, %v2170_v45  ;;  %v1580_v11 = vadd.f32 %v4812_v51, %v1551_v14 }
 0x2b6   : > { %v2119_v33 = vpop.f32.mrf.mxu0  ;;  %v2148_v39 = vpop.f32.mrf.mxu1  ;;  %v1609_v34 = vadd.f32 %v4814_v54, %v1580_v11 }
 0x2b7   : > { %v2149_v16 = vadd.f32 %v2148_v39, %v2119_v33 }
 0x2b9   : > { %v2172_v52 = vpop.f32.mrf.mxu2  ;;  %v2201_v49 = vpop.f32.mrf.mxu3 }
 0x2ba   : > { %v2173_v44 = vadd.f32 %v2172_v52, %v2144_v32 }
 0x2bc   : > { %v2202_v28 = vadd.f32 %v2201_v49, %v2173_v44 }
 0x2be   : > { %v4938_v9 = vadd.f32 %v2202_v28, %v1604_v37  ;;  %v2121_v20 = vpop.f32.mrf.mxu0  ;;  %v2150_v58 = vpop.f32.mrf.mxu1 }
 0x2bf   : > { %v2151_v13 = vadd.f32 %v2150_v58, %v2121_v20 }
 0x2c1   : > { %v2174_v2 = vpop.f32.mrf.mxu2  ;;  %v2203_v3 = vpop.f32.mrf.mxu3 }
 0x2c2   : > { %v2175_v55 = vadd.f32 %v2174_v2, %v2146_v7  ;;  %v4964_v2 = vperm.slane %v2223_v26, 2 }
 0x2c4   : > { %v4942_v32 = vadd.f32 %v2203_v3, %v2175_v55  ;;  %v4966_v3 = vperm.slane %v2223_v26, 3 }
 0x2c6   : > { %v2250_v38 = vpop.f32.mrf.mxu0  ;;  %v2291_v18 = vpop.f32.mrf.mxu1 }
 0x2c7   : > { %v2251_v19 = vadd.f32 %v2250_v38, %v4948_v61  ;;  %v2292_v45 = vadd.f32 %v2291_v18, %v4950_v23 }
 0x2c9   : > { %v2177_v6 = vpop.f32.mrf.mxu2  ;;  %v2206_v24 = vpop.f32.mrf.mxu3  ;;  %v2397_v39 = vmax.f32 %v2251_v19, 0.0  ;;  %v2398_v63 = vmax.f32 %v2292_v45, 0.0 }
 0x2ca   : > { %v2178_v7 = vadd.f32 %v2177_v6, %v2149_v16 }
 0x2cc   : > { %v2207_v57 = vadd.f32 %v2206_v24, %v2178_v7 }
 0x2ce   : > { %v4956_v47 = vadd.f32 %v2207_v57, %v1609_v34  ;;  %v2253_v62 = vpop.f32.mrf.mxu0  ;;  %v2294_v33 = vpop.f32.mrf.mxu1 }
 0x2cf   : > { %v2254_v60 = vadd.f32 %v2253_v62, %v4948_v61  ;;  %v2295_v51 = vadd.f32 %v2294_v33, %v4950_v23 }
 0x2d1   : > { %v2179_v12 = vpop.f32.mrf.mxu2  ;;  %v2208_v40 = vpop.f32.mrf.mxu3  ;;  %v2401_v16 = vmax.f32 %v2254_v60, 0.0  ;;  %v2402_v31 = vmax.f32 %v2295_v51, 0.0 }
 0x2d2   : > { %v2180_v52 = vadd.f32 %v2179_v12, %v2151_v13 }
 0x2d3   : > { %v2429_v49 = vpack.c.bf16 %v2401_v16, %v2397_v39  ;;  %v2430_v44 = vpack.c.bf16 %v2402_v31, %v2398_v63 }
 0x2d4   : > { %v4960_v37 = vadd.f32 %v2208_v40, %v2180_v52 }
 0x2d5   : > { %2709 = vmatmul.bf16.vlgmr.msrb.gmra.mxu0 %v2429_v49  ;;  %2738 = vmatmul.bf16.vlgmr.msrb.gmra.mxu1 %v2430_v44 }
 0x2d6   : > { %v2256_v54 = vpop.f32.mrf.mxu0  ;;  %v2297_v28 = vpop.f32.mrf.mxu1 }
 0x2d7   : > { %v2257_v20 = vadd.f32 %v2256_v54, %v4948_v61  ;;  %v2298_v58 = vadd.f32 %v2297_v28, %v4950_v23 }
 0x2d9   : > { %v2332_v50 = vpop.f32.mrf.mxu2  ;;  %v2373_v36 = vpop.f32.mrf.mxu3  ;;  %v2405_v55 = vmax.f32 %v2257_v20, 0.0  ;;  %v2406_v43 = vmax.f32 %v2298_v58, 0.0 }
 0x2da   : > { %v2333_v18 = vadd.f32 %v2332_v50, %v4964_v2  ;;  %v2374_v11 = vadd.f32 %v2373_v36, %v4966_v3 }
 0x2dc   : > { %v2399_v62 = vmax.f32 %v2333_v18, 0.0  ;;  %v2400_v33 = vmax.f32 %v2374_v11, 0.0 }
 0x2de   : > { %v2259_v41 = vpop.f32.mrf.mxu0  ;;  %v2300_v13 = vpop.f32.mrf.mxu1 }
 0x2df   : > { %v2260_v14 = vadd.f32 %v2259_v41, %v4948_v61  ;;  %v2301_v38 = vadd.f32 %v2300_v13, %v4950_v23 }
 0x2e1   : > { %v2335_v6 = vpop.f32.mrf.mxu2  ;;  %v2376_v24 = vpop.f32.mrf.mxu3  ;;  %v2409_v7 = vmax.f32 %v2260_v14, 0.0  ;;  %v2410_v19 = vmax.f32 %v2301_v38, 0.0 }
 0x2e2   : > { %v2336_v45 = vadd.f32 %v2335_v6, %v4964_v2  ;;  %v2377_v26 = vadd.f32 %v2376_v24, %v4966_v3 }
 0x2e3   : > { %v2433_v34 = vpack.c.bf16 %v2409_v7, %v2405_v55  ;;  %v2434_v57 = vpack.c.bf16 %v2410_v19, %v2406_v43 }
 0x2e4   : > { %v2403_v39 = vmax.f32 %v2336_v45, 0.0  ;;  %v2404_v63 = vmax.f32 %v2377_v26, 0.0 }
 0x2e5   : > { %2714 = vmatmul.bf16.gmra.mxu0 %v2433_v34  ;;  %2743 = vmatmul.bf16.gmra.mxu1 %v2434_v57 }
 0x2e6   : > { %v2431_v60 = vpack.c.bf16 %v2403_v39, %v2399_v62  ;;  %v2432_v51 = vpack.c.bf16 %v2404_v63, %v2400_v33  ;;  %v2262_v12 = vpop.f32.mrf.mxu0  ;;  %v2303_v40 = vpop.f32.mrf.mxu1 }
 0x2e7   : > { %v2263_v52 = vadd.f32 %v2262_v12, %v4948_v61  ;;  %v2304_v49 = vadd.f32 %v2303_v40, %v4950_v23 }
 0x2e8   : > { %2767 = vmatmul.bf16.vlgmr.msrb.gmra.mxu2 %v2431_v60  ;;  %2796 = vmatmul.bf16.vlgmr.msrb.gmra.mxu3 %v2432_v51 }
 0x2e9   : > { %v2338_v16 = vpop.f32.mrf.mxu2  ;;  %v2379_v31 = vpop.f32.mrf.mxu3  ;;  %v2413_v28 = vmax.f32 %v2263_v52, 0.0  ;;  %v2414_v50 = vmax.f32 %v2304_v49, 0.0 }
 0x2ea   : > { %v2339_v58 = vadd.f32 %v2338_v16, %v4964_v2  ;;  %v2380_v41 = vadd.f32 %v2379_v31, %v4966_v3 }
 0x2ec   : > { %v2407_v24 = vmax.f32 %v2339_v58, 0.0  ;;  %v2408_v7 = vmax.f32 %v2380_v41, 0.0 }
 0x2ee   : > { %v2265_v44 = vpop.f32.mrf.mxu0  ;;  %v2306_v54 = vpop.f32.mrf.mxu1 }
 0x2ef   : > { %v2266_v36 = vadd.f32 %v2265_v44, %v4948_v61  ;;  %v2307_v20 = vadd.f32 %v2306_v54, %v4950_v23 }
 0x2f1   : > { %v2341_v13 = vpop.f32.mrf.mxu2  ;;  %v2382_v55 = vpop.f32.mrf.mxu3  ;;  %v2417_v43 = vmax.f32 %v2266_v36, 0.0  ;;  %v2418_v14 = vmax.f32 %v2307_v20, 0.0 }
 0x2f2   : > { %v2342_v38 = vadd.f32 %v2341_v13, %v4964_v2  ;;  %v2383_v18 = vadd.f32 %v2382_v55, %v4966_v3 }
 0x2f3   : > { %v2437_v11 = vpack.c.bf16 %v2417_v43, %v2413_v28  ;;  %v2438_v6 = vpack.c.bf16 %v2418_v14, %v2414_v50 }
 0x2f4   : > { %v2411_v19 = vmax.f32 %v2342_v38, 0.0  ;;  %v2412_v45 = vmax.f32 %v2383_v18, 0.0 }
 0x2f5   : > { %2719 = vmatmul.bf16.gmra.mxu0 %v2437_v11  ;;  %2748 = vmatmul.bf16.gmra.mxu1 %v2438_v6 }
 0x2f6   : > { %v2435_v26 = vpack.c.bf16 %v2411_v19, %v2407_v24  ;;  %v2436_v34 = vpack.c.bf16 %v2412_v45, %v2408_v7  ;;  %v2268_v57 = vpop.f32.mrf.mxu0  ;;  %v2309_v62 = vpop.f32.mrf.mxu1 }
 0x2f7   : > { %v2269_v63 = vadd.f32 %v2268_v57, %v4948_v61  ;;  %v2310_v60 = vadd.f32 %v2309_v62, %v4950_v23 }
 0x2f8   : > { %2772 = vmatmul.bf16.gmra.mxu2 %v2435_v26  ;;  %2801 = vmatmul.bf16.gmra.mxu3 %v2436_v34 }
 0x2f9   : > { %v2344_v33 = vpop.f32.mrf.mxu2  ;;  %v2385_v39 = vpop.f32.mrf.mxu3  ;;  %v2421_v40 = vmax.f32 %v2269_v63, 0.0  ;;  %v2422_v16 = vmax.f32 %v2310_v60, 0.0 }
 0x2fa   : > { %v2345_v49 = vadd.f32 %v2344_v33, %v4964_v2  ;;  %v2386_v44 = vadd.f32 %v2385_v39, %v4966_v3 }
 0x2fc   : > { %v2415_v55 = vmax.f32 %v2345_v49, 0.0  ;;  %v2416_v43 = vmax.f32 %v2386_v44, 0.0 }
 0x2fe   : > { %v2271_v51 = vpop.f32.mrf.mxu0  ;;  %v2312_v12 = vpop.f32.mrf.mxu1 }
 0x2ff   : > { %v2272_v31 = vadd.f32 %v2271_v51, %v4948_v61  ;;  %v2313_v52 = vadd.f32 %v2312_v12, %v4950_v23  ;;  %v1230_v12 = vadd.f32 %v4652_v22, %v4650_v21 }
 0x301   : > { %v2347_v54 = vpop.f32.mrf.mxu2  ;;  %v2388_v28 = vpop.f32.mrf.mxu3  ;;  %v2425_v50 = vmax.f32 %v2272_v31, 0.0  ;;  %v2426_v36 = vmax.f32 %v2313_v52, 0.0 }
 0x302   : > { %v2348_v20 = vadd.f32 %v2347_v54, %v4964_v2  ;;  %v2389_v58 = vadd.f32 %v2388_v28, %v4966_v3 }
 0x303   : > { %v2441_v41 = vpack.c.bf16 %v2425_v50, %v2421_v40  ;;  %v2442_v13 = vpack.c.bf16 %v2426_v36, %v2422_v16  ;;  %v2881_v36 = vld [vmem:[#allocation6 + $0x78] sm:$0xff] }
 0x304   : > { %v2419_v14 = vmax.f32 %v2348_v20, 0.0  ;;  %v2420_v61 = vmax.f32 %v2389_v58, 0.0  ;;  %v2880_v20 = vld [vmem:[#allocation6 + $0x70] sm:$0xff]  ;;  %2883 = vmatpush.msra.mxu0 %v2881_v36  ;;  %v1235_v58 = vadd.f32 %v4678_v30, %v4676_v17 }
 0x305   : > { %2724 = vmatmul.bf16.gmra.mxu0 %v2441_v41  ;;  %2753 = vmatmul.bf16.gmra.mxu1 %v2442_v13 }
 0x306   : > { %v2439_v23 = vpack.c.bf16 %v2419_v14, %v2415_v55  ;;  %v2440_v38 = vpack.c.bf16 %v2420_v61, %v2416_v43  ;;  %2884 = vmatpush.msra.mxu0 %v2880_v20  ;;  %v1264_v43 = vadd.f32 %v4698_v10, %v1235_v58 }
 0x308   : > { %2777 = vmatmul.bf16.gmra.mxu2 %v2439_v23  ;;  %2806 = vmatmul.bf16.gmra.mxu3 %v2440_v38 }
 0x309   : > { %v2350_v18 = vpop.f32.mrf.mxu2  ;;  %v2391_v11 = vpop.f32.mrf.mxu3 }
 0x30a   : > { %v2351_v6 = vadd.f32 %v2350_v18, %v4964_v2  ;;  %v2392_v24 = vadd.f32 %v2391_v11, %v4966_v3  ;;  %v1293_v18 = vadd.f32 %v4700_v42, %v1264_v43 }
 0x30c   : > { %v2423_v34 = vmax.f32 %v2351_v6, 0.0  ;;  %v2424_v57 = vmax.f32 %v2392_v24, 0.0 }
 0x311   : > { %v2353_v7 = vpop.f32.mrf.mxu2  ;;  %v2394_v19 = vpop.f32.mrf.mxu3 }
 0x312   : > { %v2354_v45 = vadd.f32 %v2353_v7, %v4964_v2  ;;  %v2395_v26 = vadd.f32 %v2394_v19, %v4966_v3  ;;  %v1259_v2 = vadd.f32 %v4672_v4, %v1230_v12  ;;  %v5007_v4 = vld [vmem:[%s5122_s4] ss:$0 sm:$0xff] }
 0x314   : > { %v2427_v62 = vmax.f32 %v2354_v45, 0.0  ;;  %v2428_v33 = vmax.f32 %v2395_v26, 0.0  ;;  %v1288_v3 = vadd.f32 %v4674_v5, %v1259_v2  ;;  %v2877_v26 = vld [vmem:[#allocation6 + $0x58] sm:$0xff] }
 0x315   : > { %v5163_v2 = vld [vmem:[#allocation22_spill] sm:$0xff] }
 0x316   : > { %v2443_v39 = vpack.c.bf16 %v2427_v62, %v2423_v34  ;;  %v2444_v63 = vpack.c.bf16 %v2428_v33, %v2424_v57  ;;  %v1509_v31 = vadd.f32 %v4757_v25, %v1288_v3  ;;  %v2876_v34 = vld [vmem:[#allocation6 + $0x50] sm:$0xff] }
 0x318   : > { %2782 = vmatmul.bf16.gmra.mxu2 %v2443_v39  ;;  %2811 = vmatmul.bf16.gmra.mxu3 %v2444_v63  ;;  %v1538_v21 = vadd.f32 %v4759_v8, %v1509_v31  ;;  %v1240_v39 = vadd.f32 %v4704_v15, %v4702_v56 }
 0x31a   : > { %v1567_v5 = vadd.f32 %v4769_v29, %v1538_v21  ;;  %v2879_v29 = vld [vmem:[#allocation6 + $0x68] sm:$0xff] }
 0x31b   : > { %2885 = vmatpush.msra.mxu0 %v2879_v29  ;;  %v5169_v29 = vld [vmem:[#allocation20_spill] sm:$0xff] }
 0x31c   : > { %v1596_v14 = vadd.f32 %v4771_v27, %v1567_v5  ;;  %v1514_v27 = vadd.f32 %v4773_v46, %v1293_v18  ;;  %v5170_v18 = vld [vmem:[#allocation17_spill] sm:$0xff] }
 0x31e   : > { %v2212_v17 = vadd.f32 %v4924_v0, %v1596_v14  ;;  %v1543_v0 = vadd.f32 %v4775_v35, %v1514_v27  ;;  %v5171_v27 = vld [vmem:[#allocation26_spill] sm:$0xff] }
 0x320   : > { %v1572_v42 = vadd.f32 %v4785_v53, %v1543_v0  ;;  %v2875_v53 = vld [vmem:[#allocation6 + $0x48] sm:$0xff] }
 0x322   : > { %v1601_v35 = vadd.f32 %v5163_v2, %v1572_v42  ;;  %v2872_v42 = vld [vmem:[#allocation6 + $0x30] sm:$0xff]  ;;  %v5174_v2 = vld [vmem:[#allocation28_spill] sm:$0xff] }
 0x324   : > { %v2214_v56 = vadd.f32 %v4933_v1, %v1601_v35 }
 0x352   : > { %v2710_v60 = vpop.f32.mrf.mxu0  ;;  %v2739_v51 = vpop.f32.mrf.mxu1 }
 0x353   : > { %v2740_v52 = vadd.f32 %v2739_v51, %v2710_v60  ;;  %v5162_v51 = vld [vmem:[#allocation16_spill] sm:$0xff] }
 0x354   : > { %v1269_v12 = vadd.f32 %v5162_v51, %v1240_v39 }
 0x35a   : > { %v2712_v40 = vpop.f32.mrf.mxu0  ;;  %v2741_v16 = vpop.f32.mrf.mxu1 }
 0x35b   : > { %v2742_v41 = vadd.f32 %v2741_v16, %v2712_v40 }
 0x362   : > { %v2715_v54 = vpop.f32.mrf.mxu0  ;;  %v2744_v28 = vpop.f32.mrf.mxu1 }
 0x363   : > { %v2745_v11 = vadd.f32 %v2744_v28, %v2715_v54  ;;  %v5165_v28 = vld [vmem:[#allocation23_spill] sm:$0xff] }
 0x36a   : > { %v2717_v30 = vpop.f32.mrf.mxu0  ;;  %v2746_v23 = vpop.f32.mrf.mxu1 }
 0x36b   : > { %v2768_v49 = vpop.f32.mrf.mxu2  ;;  %v2797_v44 = vpop.f32.mrf.mxu3  ;;  %v2747_v63 = vadd.f32 %v2746_v23, %v2717_v30 }
 0x36c   : > { %v2769_v50 = vadd.f32 %v2768_v49, %v2740_v52  ;;  %v2874_v52 = vld [vmem:[#allocation6 + $0x40] sm:$0xff]  ;;  %v5164_v49 = vld [vmem:[#allocation18_spill] sm:$0xff] }
 0x36e   : > { %v2798_v22 = vadd.f32 %v2797_v44, %v2769_v50  ;;  %v1298_v44 = vadd.f32 %v5164_v49, %v1269_v12  ;;  %v2867_v49 = vld [vmem:[#allocation6 + $0x8] sm:$0xff] }
 0x370   : > { %v2817_v25 = vadd.f32 %v2798_v22, %v4920_v59  ;;  %v2878_v59 = vld [vmem:[#allocation6 + $0x60] sm:$0xff]  ;;  %v1519_v50 = vadd.f32 %v5165_v28, %v1298_v44 }
 0x371   : > { %2886 = vmatpush.msra.mxu0 %v2878_v59  ;;  %v2866_v28 = vld [vmem:[#allocation6] sm:$0xff] }
 0x372   : > { %v2829_v13 = vadd.f32 %v5007_v4, %v2817_v25  ;;  %v2720_v62 = vpop.f32.mrf.mxu0  ;;  %v2749_v46 = vpop.f32.mrf.mxu1 }
 0x373   : > { %v2770_v55 = vpop.f32.mrf.mxu2  ;;  %v2799_v8 = vpop.f32.mrf.mxu3  ;;  %2887 = vmatpush.msra.mxu0 %v2877_v26  ;;  %v2750_v36 = vadd.f32 %v2749_v46, %v2720_v62  ;;  %v2873_v26 = vld [vmem:[#allocation6 + $0x38] sm:$0xff] }
 0x374   : > { %2837 = vst [vmem:[%s5016_s20] sm:$0xff] %v2829_v13  ;;  %v2771_v61 = vadd.f32 %v2770_v55, %v2742_v41  ;;  %v5173_v62 = vld [vmem:[#allocation27_spill] sm:$0xff] }
 0x375   : > { %2888 = vmatpush.msra.mxu0 %v2876_v34  ;;  %v5172_v34 = vld [vmem:[#allocation21_spill] sm:$0xff] }
 0x376   : > { %v2800_v38 = vadd.f32 %v2799_v8, %v2771_v61  ;;  %v5167_v8 = vld [vmem:[#allocation25_spill] sm:$0xff]  ;;  %v5168_v61 = vld [vmem:[#allocation19_spill] sm:$0xff] }
 0x377   : > { %2889 = vmatpush.msra.mxu0 %v2875_v53  ;;  %v1245_v59 = vadd.f32 %v5169_v29, %v5168_v61 }
 0x378   : > { %v2818_v10 = vadd.f32 %v2800_v38, %v2212_v17 }
 0x379   : > { %2890 = vmatpush.msra.mxu0 %v2874_v52 }
 0x37a   : > { %v2830_v6 = vadd.f32 %v5007_v4, %v2818_v10  ;;  %v2722_v20 = vpop.f32.mrf.mxu0  ;;  %v2751_v21 = vpop.f32.mrf.mxu1  ;;  %v1274_v10 = vadd.f32 %v5170_v18, %v1245_v59 }
 0x37b   : > { %v2773_v24 = vpop.f32.mrf.mxu2  ;;  %v2802_v7 = vpop.f32.mrf.mxu3  ;;  %v2752_v17 = vadd.f32 %v2751_v21, %v2722_v20  ;;  %2891 = vmatpush.msra.mxu0 %v2873_v26 }
 0x37c   : > { %2838 = vst [vmem:[%s5016_s20 + $0x8] sm:$0xff] %v2830_v6  ;;  %v2846_v19 = vadd.f32 %v2830_v6, %v2829_v13  ;;  %v2774_v45 = vadd.f32 %v2773_v24, %v2745_v11  ;;  %v5166_v13 = vld [vmem:[#allocation24_spill] sm:$0xff]  ;;  %v1303_v0 = vadd.f32 %v5172_v34, %v1274_v10 }
 0x37d   : > { %v1548_v1 = vadd.f32 %v5166_v13, %v1519_v50  ;;  %2892 = vmatpush.msra.mxu0 %v2872_v42 }
 0x37e   : > { %v2803_v57 = vadd.f32 %v2802_v7, %v2774_v45  ;;  %v1524_v46 = vadd.f32 %v5173_v62, %v1303_v0 }
 0x37f   : > { %v1577_v43 = vadd.f32 %v5167_v8, %v1548_v1 }
 0x380   : > { %v2819_v33 = vadd.f32 %v2803_v57, %v4929_v48  ;;  %v4138_v48 = vmov 0.0   ;;  %v1553_v35 = vadd.f32 %v5174_v2, %v1524_v46 }
 0x381   : > { %383 = vst [vmem:[#allocation2] sm:$0x1] %v4138_v48  ;;  %v1606_v11 = vadd.f32 %v5171_v27, %v1577_v43  ;;  %v5175_v48 = vld [vmem:[#allocation29_spill] sm:$0xff] }
 0x382   : > { %v2831_v60 = vadd.f32 %v5007_v4, %v2819_v33  ;;  %v2725_v7 = vpop.f32.mrf.mxu0 }
 0x383   : > { %v2775_v40 = vpop.f32.mrf.mxu2  ;;  %v2804_v16 = vpop.f32.mrf.mxu3 }
 0x384   : > { %2839 = vst [vmem:[%s5016_s20 + $0x10] sm:$0xff] %v2831_v60  ;;  %v2847_v3 = vadd.f32 %v2846_v19, %v2831_v60  ;;  %v2776_v31 = vadd.f32 %v2775_v40, %v2747_v63  ;;  %v2754_v19 = vpop.f32.mrf.mxu1  ;;  %v2871_v63 = vld [vmem:[#allocation6 + $0x28] sm:$0xff]  ;;  %v2870_v40 = vld [vmem:[#allocation6 + $0x20] sm:$0xff] }
 0x385   : > { %v2755_v33 = vadd.f32 %v2754_v19, %v2725_v7  ;;  %2893 = vmatpush.msra.mxu0 %v2871_v63 }
 0x386   : > { %v2805_v15 = vadd.f32 %v2804_v16, %v2776_v31  ;;  %v2869_v16 = vld [vmem:[#allocation6 + $0x18] sm:$0xff]  ;;  %v2868_v31 = vld [vmem:[#allocation6 + $0x10] sm:$0xff] }
 0x387   : > { %2894 = vmatpush.msra.mxu0 %v2870_v40 }
 0x388   : > { %v2820_v54 = vadd.f32 %v2805_v15, %v2214_v56  ;;  %v1582_v56 = vadd.f32 %v5175_v48, %v1553_v35  ;;  %v2845_v61 = vld [vmem:[#allocation2] sm:$0x1] }
 0x389   : > { %2895 = vmatpush.msra.mxu0 %v2869_v16 }
 0x38a   : > { %v2832_v22 = vadd.f32 %v5007_v4, %v2820_v54  ;;  %v2727_v53 = vpop.f32.mrf.mxu0 }
 0x38b   : > { %v2778_v5 = vpop.f32.mrf.mxu2  ;;  %v2807_v25 = vpop.f32.mrf.mxu3  ;;  %2896 = vmatpush.msra.mxu0 %v2868_v31 }
 0x38c   : > { %2840 = vst [vmem:[%s5016_s20 + $0x18] sm:$0xff] %v2832_v22  ;;  %v2848_v58 = vadd.f32 %v2847_v3, %v2832_v22  ;;  %v2779_v41 = vadd.f32 %v2778_v5, %v2750_v36  ;;  %v2756_v52 = vpop.f32.mrf.mxu1  ;;  %v5176_v36 = vld [vmem:[#allocation30_spill] sm:$0xff] }
 0x38d   : > { %v2757_v44 = vadd.f32 %v2756_v52, %v2727_v53  ;;  %2897 = vmatpush.msra.mxu0 %v2867_v49  ;;  %v1611_v20 = vadd.f32 %v5176_v36, %v1582_v56 }
 0x38e   : > { %v2808_v55 = vadd.f32 %v2807_v25, %v2779_v41 }
 0x38f   : > { %2898 = vmatpush.msra.mxu0 %v2866_v28  ;;  %v2218_v25 = vadd.f32 %v4960_v37, %v1611_v20 }
 0x390   : > { %v2821_v14 = vadd.f32 %v2808_v55, %v4938_v9  ;;  %v2216_v9 = vadd.f32 %v4942_v32, %v1606_v11 }
 0x392   : > { %v2833_v30 = vadd.f32 %v5007_v4, %v2821_v14 }
 0x393   : > { %v2780_v23 = vpop.f32.mrf.mxu2  ;;  %v2809_v38 = vpop.f32.mrf.mxu3 }
 0x394   : > { %2841 = vst [vmem:[%s5016_s20 + $0x20] sm:$0xff] %v2833_v30  ;;  %v2849_v6 = vadd.f32 %v2848_v58, %v2833_v30  ;;  %v2781_v24 = vadd.f32 %v2780_v23, %v2752_v17 }
 0x396   : > { %v2810_v45 = vadd.f32 %v2809_v38, %v2781_v24 }
 0x398   : > { %v2822_v57 = vadd.f32 %v2810_v45, %v2216_v9 }
 0x39a   : > { %v2834_v39 = vadd.f32 %v5007_v4, %v2822_v57 }
 0x39b   : > { %v2783_v60 = vpop.f32.mrf.mxu2  ;;  %v2812_v51 = vpop.f32.mrf.mxu3 }
 0x39c   : > { %2842 = vst [vmem:[%s5016_s20 + $0x28] sm:$0xff] %v2834_v39  ;;  %v2850_v12 = vadd.f32 %v2849_v6, %v2834_v39  ;;  %v2784_v32 = vadd.f32 %v2783_v60, %v2755_v33 }
 0x39e   : > { %v2813_v3 = vadd.f32 %v2812_v51, %v2784_v32 }
 0x3a0   : > { %v2823_v15 = vadd.f32 %v2813_v3, %v4956_v47 }
 0x3a2   : > { %v2835_v54 = vadd.f32 %v5007_v4, %v2823_v15 }
 0x3a3   : > { %v2785_v50 = vpop.f32.mrf.mxu2  ;;  %v2814_v5 = vpop.f32.mrf.mxu3 }
 0x3a4   : > { %2843 = vst [vmem:[%s5016_s20 + $0x30] sm:$0xff] %v2835_v54  ;;  %v2851_v21 = vadd.f32 %v2850_v12, %v2835_v54  ;;  %v2786_v22 = vadd.f32 %v2785_v50, %v2757_v44 }
 0x3a6   : > { %v2815_v47 = vadd.f32 %v2814_v5, %v2786_v22 }
 0x3a8   : > { %v2824_v58 = vadd.f32 %v2815_v47, %v2218_v25 }
 0x3aa   : > { %v2836_v41 = vadd.f32 %v5007_v4, %v2824_v58 }
 0x3ac   : > { %2844 = vst [vmem:[%s5016_s20 + $0x38] sm:$0xff] %v2836_v41  ;;  %v2852_v13 = vadd.f32 %v2851_v21, %v2836_v41 }
 0x3ae   : > { %v2853_v1 = vrot.slane %v2852_v13, 4 }
 0x3b0   : > { %v2854_v55 = vadd.f32 %v2853_v1, %v2852_v13 }
 0x3b2   : > { %v2855_v8 = vrot.slane %v2854_v55, 2 }
 0x3b4   : > { %v2856_v43 = vadd.f32 %v2855_v8, %v2854_v55 }
 0x3b6   : > { %v2857_v14 = vrot.slane %v2856_v43, 1 }
 0x3b8   : > { %v2858_v29 = vadd.f32 %v2857_v14, %v2856_v43 }
 0x3ba   : > { %v2859_v59 = vadd.f32 %v2858_v29, %v2845_v61 }
 0x3bc   : > { %2860 = vst [vmem:[#allocation2] sm:$0x1] %v2859_v59 }
 0x3c3   : > { %v2864_v37 = vld [vmem:[#allocation2] sm:$0x1] }
 0x3c4   : > { %v2865_v17 = vmul.f32 0.015625, %v2864_v37 }
 0x3c6   : > { %2899 = vmatmul.f32.vlgmr.msra.gmra.mxu0 %v2865_v17 }
 0x3c7   : > { %4039 = shalt.err (!%p4036_p9)
}
 0x3c8   : > { %s4139_s20 = smov 128   ;;  %s4140_s14 = smov 8   ;;  %v2882_v4 = vld [vmem:[%s5124_s6] sm:$0x1] }
 0x3c9   : > { %3863 = dma.vmem_to_hbm [thread:$0]  (%p4226_p4), %s2924_s13, 1024, %s2926_s3, %s2905_s23, %s4139_s20, %s4139_s20, %s4140_s14  }
 0x3ca   : > { %s2937_s26 = scalar_lea.hbm %s5126_s8, %s4122_s30  ;;  %s367_s24 = scalar_lea.vmem [#allocation9], %s5000_s25 }
 0x3cb   : > { %s2939_s19 = sshll.u32 %s367_s24, 4  ;;  %s2941_s11 = sshll.u32 %s2937_s26, 4  ;;  %s2940_s19 = int_to_ptr.vmem [resolvable:$true] %s2939_s19  ;;  %s2942_s11 = int_to_ptr.hbm [resolvable:$true] %s2941_s11 }
 0x3cc   : > { %s2910_s16 = scalar_lea.sflag [#allocation10], %s5000_s25  ;;  %s4054_s1 = sshra.s32 %s2942_s11, 4  ;;  %s4055_s1 = int_to_ptr.hbm [resolvable:$true] %s4054_s1 }
 0x3cd   : > { %s4056_s13 = scalar_lea.hbm %s4055_s1, 1  ;;  %s4060_s23 = scalar_lea.hbm %s5126_s8, 2 }
 0x3ce   : > { %p4057_p10 = scmp.ne.s32.totalorder %s4055_s1, %s4056_s13  ;;  %p4061_p13 = scmp.lt.s32.totalorder %s4055_s1, %s5126_s8 }
 0x3cf   : > { %p4062_p0 = scmp.lt.s32.totalorder %s4060_s23, %s4056_s13 }
 0x3d0   : > { %p4058_p11 = pnand %p4057_p10, %p4226_p4 }
 0x3d1   : > { %p4063_p1 = por %p4062_p0, %p4061_p13 }
 0x3d2   : > { %p4059_p12 = pneg %p4058_p11 }
 0x3d4   : > { %p4064_p2 = pnand %p4063_p1, %p4059_p12 }
 0x443   : > { %v2900_v30 = vpop.f32.mrf.mxu0 }
 0x444   : > { %v2901_v23 = vadd.f32 %v2900_v30, %v2882_v4 }
 0x446   : > { %2903 = vst [vmem:[%s367_s24] sm:$0x1] %v2901_v23 }
 0x447   : > { %4067 = shalt.err (!%p4064_p2)
}
 0x448   : > { %3864 = dma.vmem_to_hbm [thread:$0]  (%p4226_p4), %s2940_s19, 16, %s2942_s11, %s2910_s16  }
 0x449 PF: > { %p3885_p3 = scmp.ge.s32.totalorder %s4130_s10, 2  ;;  %s2953_s25 = sand.u32 1, %s4110_s27  }
 0x44a   : > { %s2954_s21 = scalar_lea.sflag [#allocation5], %s2953_s25 }
 0x44b   : > { %p3875_p5 = pnand %p3885_p3, %p4233_p8 }
 0x44d   : > { %p3876_p6 = pneg %p3875_p5 }
 0x44f   : > { %4101 = dma.done.wait (%p3876_p6), %s2954_s21, 1024  }
 0x450   : > { %4103 = vsyncadd (%p3876_p6), %s2954_s21, 4294966272  ;;  %s2964_s1 = scalar_lea.sflag [#allocation10], %s2953_s25 }
 0x451   : > { %4105 = dma.done.wait (%p3876_p6), %s2964_s1, 16  }
 0x452   : > { %4107 = vsyncadd (%p3876_p6), %s2964_s1, 4294967280  ;;  %s27_s10 = sadd.s32 1, %s4130_s10   ;;  %s5177_s15 = sld [smem:[#allocation15_spill]] }
 0x453   : > { %p24_p7 = scmp.ge.s32.totalorder %s27_s10, 4   ;;  %s5178_s27 = smov %s4114_s28 }
 0x454   : > { %s5179_s28 = smov %s4118_s29  ;;  %s5180_s29 = smov %s4239_s18 }
 0x455   : > { %s5181_s30 = smov %s4126_s9  ;;  %26 = sbr.rel (!%p24_p7) target bundleno = 12 (0xc), region = 117 }
 0x458   : > { %s5182_s9 = smov %s5177_s15 }
 0x45a   :  { %2969 = vsyncpa [#allocation4], 1 }
 0x45b   :  { %2971 = vsyncpa [#allocation4 + $0x1], 1 }
 0x45c   :  { %2972 = vsyncpa [#allocation7], 1 }
 0x45d   :  { %2973 = vsyncpa [#allocation5], 1 }
 0x45e   :  { %2975 = vsyncpa [#allocation5 + $0x1], 1 }
 0x45f   :  { %2976 = vsyncpa [#allocation10], 1 }
 0x460   :  { %2978 = vsyncpa [#allocation10 + $0x1], 1 }

</bundles_post_ra>
